<compile_context>
chip_gen: v7x
topology: tpu7x:2x2x1
jax: 0.10.0
libtpu: 0.0.40
codegen_flags: <defaults>
</compile_context>

<pallas_src>
import functools

import jax
import jax.numpy as jnp
from jax.experimental import pallas as pl
from jax.experimental.pallas import tpu as pltpu

EPS = 1e-5
LANE = 128                       # lane-dense padding for channel / contraction dims
DEF_ROW_TILE = 512               # default row tile over N*Ho*Wo (multiple of 8)
VMEM_LIMIT = 64 * 1024 * 1024    # explicit scoped-VMEM limit (fits all generations)


def _round_up(a, b):
    return (a + b - 1) // b * b


# ---------------------------------------------------------------------------
# Pallas kernels
# ---------------------------------------------------------------------------
def _conv_stats_kernel(p_ref, w_ref, y_ref, stats_ref, *, tr, n_valid):
    """conv-as-matmul (bf16 in, f32 acc) + masked per-channel sum / sum-sq accumulation."""
    i = pl.program_id(0)
    acc = jnp.dot(p_ref[...], w_ref[...], preferred_element_type=jnp.float32)
    y_ref[...] = acc.astype(y_ref.dtype)

    @pl.when(i == 0)
    def _():
        stats_ref[...] = jnp.zeros_like(stats_ref)

    # Mask rows that are padding (global row >= n_valid) out of the BN statistics.
    row = i * tr + jax.lax.broadcasted_iota(jnp.int32, acc.shape, 0)
    accm = jnp.where(row < n_valid, acc, 0.0)
    stats_ref[0:1, :] += jnp.sum(accm, axis=0, keepdims=True)
    stats_ref[1:2, :] += jnp.sum(accm * accm, axis=0, keepdims=True)


def _conv2_skip_stats_kernel(p2_ref, w2_ref, ps_ref, ws_ref,
                             y2_ref, ysk_ref, st2_ref, stsk_ref, *, tr, n_valid):
    """conv2 matmul + 1x1 projection-skip matmul, both with masked stats accumulation."""
    i = pl.program_id(0)
    a2 = jnp.dot(p2_ref[...], w2_ref[...], preferred_element_type=jnp.float32)
    ask = jnp.dot(ps_ref[...], ws_ref[...], preferred_element_type=jnp.float32)
    y2_ref[...] = a2.astype(y2_ref.dtype)
    ysk_ref[...] = ask.astype(ysk_ref.dtype)

    @pl.when(i == 0)
    def _():
        st2_ref[...] = jnp.zeros_like(st2_ref)
        stsk_ref[...] = jnp.zeros_like(stsk_ref)

    row = i * tr + jax.lax.broadcasted_iota(jnp.int32, a2.shape, 0)
    valid = row < n_valid
    a2m = jnp.where(valid, a2, 0.0)
    askm = jnp.where(valid, ask, 0.0)
    st2_ref[0:1, :] += jnp.sum(a2m, axis=0, keepdims=True)
    st2_ref[1:2, :] += jnp.sum(a2m * a2m, axis=0, keepdims=True)
    stsk_ref[0:1, :] += jnp.sum(askm, axis=0, keepdims=True)
    stsk_ref[1:2, :] += jnp.sum(askm * askm, axis=0, keepdims=True)


def _bn_relu_kernel(y_ref, stats_ref, g_ref, b_ref, o_ref, *, inv_n):
    """Folded BN (y*scale+shift) + ReLU, tiled elementwise."""
    mean = stats_ref[0:1, :] * inv_n
    var = stats_ref[1:2, :] * inv_n - mean * mean
    scale = g_ref[...] * jax.lax.rsqrt(var + EPS)
    shift = b_ref[...] - mean * scale
    o_ref[...] = jnp.maximum(y_ref[...] * scale + shift, 0.0).astype(o_ref.dtype)


def _bn_add_relu_skip_kernel(y2_ref, ysk_ref, st2_ref, stsk_ref,
                             g2_ref, b2_ref, gs_ref, bs_ref, o_ref, *, inv_n):
    """BN2(y2) + BN_skip(ysk) + ReLU, tiled elementwise."""
    m2 = st2_ref[0:1, :] * inv_n
    v2 = st2_ref[1:2, :] * inv_n - m2 * m2
    s2 = g2_ref[...] * jax.lax.rsqrt(v2 + EPS)
    t2 = b2_ref[...] - m2 * s2
    ms = stsk_ref[0:1, :] * inv_n
    vs = stsk_ref[1:2, :] * inv_n - ms * ms
    ss = gs_ref[...] * jax.lax.rsqrt(vs + EPS)
    ts = bs_ref[...] - ms * ss
    o_ref[...] = jnp.maximum(
        (y2_ref[...] * s2 + t2) + (ysk_ref[...] * ss + ts), 0.0).astype(o_ref.dtype)


def _bn_add_relu_id_kernel(y2_ref, xid_ref, st2_ref, g2_ref, b2_ref, o_ref, *, inv_n):
    """BN2(y2) + identity skip + ReLU, tiled elementwise."""
    m2 = st2_ref[0:1, :] * inv_n
    v2 = st2_ref[1:2, :] * inv_n - m2 * m2
    s2 = g2_ref[...] * jax.lax.rsqrt(v2 + EPS)
    t2 = b2_ref[...] - m2 * s2
    o_ref[...] = jnp.maximum(y2_ref[...] * s2 + t2 + xid_ref[...], 0.0).astype(o_ref.dtype)


# ---------------------------------------------------------------------------
# pallas_call builders (grid = row tiles of N*Ho*Wo)
# ---------------------------------------------------------------------------
def _conv_stats_call(p, w, tr, n_valid):
    m_pad, kp = p.shape
    cp = w.shape[1]
    return pl.pallas_call(
        functools.partial(_conv_stats_kernel, tr=tr, n_valid=n_valid),
        grid=(m_pad // tr,),
        in_specs=[
            pl.BlockSpec((tr, kp), lambda i: (i, 0)),   # patch rows: pipelined
            pl.BlockSpec((kp, cp), lambda i: (0, 0)),   # weights: resident
        ],
        out_specs=(
            pl.BlockSpec((tr, cp), lambda i: (i, 0)),   # raw conv output
            pl.BlockSpec((8, cp), lambda i: (0, 0)),    # stats accumulator (resident)
        ),
        out_shape=(
            jax.ShapeDtypeStruct((m_pad, cp), jnp.float32),
            jax.ShapeDtypeStruct((8, cp), jnp.float32),
        ),
        compiler_params=pltpu.CompilerParams(
            dimension_semantics=("arbitrary",), vmem_limit_bytes=VMEM_LIMIT),
        cost_estimate=pl.CostEstimate(
            flops=2 * m_pad * kp * cp, transcendentals=0,
            bytes_accessed=m_pad * kp * 2 + kp * cp * 2 + m_pad * cp * 4 + 8 * cp * 4),
    )(p, w)


def _conv2_skip_call(p2, w2, ps, ws, tr, n_valid):
    m_pad, k2p = p2.shape
    cp = w2.shape[1]
    cinp = ps.shape[1]
    return pl.pallas_call(
        functools.partial(_conv2_skip_stats_kernel, tr=tr, n_valid=n_valid),
        grid=(m_pad // tr,),
        in_specs=[
            pl.BlockSpec((tr, k2p), lambda i: (i, 0)),
            pl.BlockSpec((k2p, cp), lambda i: (0, 0)),
            pl.BlockSpec((tr, cinp), lambda i: (i, 0)),
            pl.BlockSpec((cinp, cp), lambda i: (0, 0)),
        ],
        out_specs=(
            pl.BlockSpec((tr, cp), lambda i: (i, 0)),
            pl.BlockSpec((tr, cp), lambda i: (i, 0)),
            pl.BlockSpec((8, cp), lambda i: (0, 0)),
            pl.BlockSpec((8, cp), lambda i: (0, 0)),
        ),
        out_shape=(
            jax.ShapeDtypeStruct((m_pad, cp), jnp.float32),
            jax.ShapeDtypeStruct((m_pad, cp), jnp.float32),
            jax.ShapeDtypeStruct((8, cp), jnp.float32),
            jax.ShapeDtypeStruct((8, cp), jnp.float32),
        ),
        compiler_params=pltpu.CompilerParams(
            dimension_semantics=("arbitrary",), vmem_limit_bytes=VMEM_LIMIT),
        cost_estimate=pl.CostEstimate(
            flops=2 * m_pad * (k2p + cinp) * cp, transcendentals=0,
            bytes_accessed=m_pad * (k2p + cinp) * 2 + (k2p + cinp) * cp * 2
            + 2 * m_pad * cp * 4 + 16 * cp * 4),
    )(p2, w2, ps, ws)


def _bn_relu_call(y, stats, g, b, tr, n_valid):
    m_pad, cp = y.shape
    return pl.pallas_call(
        functools.partial(_bn_relu_kernel, inv_n=1.0 / n_valid),
        grid=(m_pad // tr,),
        in_specs=[
            pl.BlockSpec((tr, cp), lambda i: (i, 0)),
            pl.BlockSpec((8, cp), lambda i: (0, 0)),
            pl.BlockSpec((1, cp), lambda i: (0, 0)),
            pl.BlockSpec((1, cp), lambda i: (0, 0)),
        ],
        out_specs=pl.BlockSpec((tr, cp), lambda i: (i, 0)),
        out_shape=jax.ShapeDtypeStruct((m_pad, cp), jnp.bfloat16),
        compiler_params=pltpu.CompilerParams(
            dimension_semantics=("parallel",), vmem_limit_bytes=VMEM_LIMIT),
        cost_estimate=pl.CostEstimate(
            flops=4 * m_pad * cp, transcendentals=cp,
            bytes_accessed=m_pad * cp * 4 + m_pad * cp * 2 + 10 * cp * 4),
    )(y, stats, g, b)


def _bn_add_relu_skip_call(y2, ysk, st2, stsk, g2, b2, gs, bs, tr, n_valid):
    m_pad, cp = y2.shape
    return pl.pallas_call(
        functools.partial(_bn_add_relu_skip_kernel, inv_n=1.0 / n_valid),
        grid=(m_pad // tr,),
        in_specs=[
            pl.BlockSpec((tr, cp), lambda i: (i, 0)),
            pl.BlockSpec((tr, cp), lambda i: (i, 0)),
            pl.BlockSpec((8, cp), lambda i: (0, 0)),
            pl.BlockSpec((8, cp), lambda i: (0, 0)),
            pl.BlockSpec((1, cp), lambda i: (0, 0)),
            pl.BlockSpec((1, cp), lambda i: (0, 0)),
            pl.BlockSpec((1, cp), lambda i: (0, 0)),
            pl.BlockSpec((1, cp), lambda i: (0, 0)),
        ],
        out_specs=pl.BlockSpec((tr, cp), lambda i: (i, 0)),
        out_shape=jax.ShapeDtypeStruct((m_pad, cp), jnp.float32),
        compiler_params=pltpu.CompilerParams(
            dimension_semantics=("parallel",), vmem_limit_bytes=VMEM_LIMIT),
        cost_estimate=pl.CostEstimate(
            flops=8 * m_pad * cp, transcendentals=2 * cp,
            bytes_accessed=3 * m_pad * cp * 4 + 24 * cp * 4),
    )(y2, ysk, st2, stsk, g2, b2, gs, bs)


def _bn_add_relu_id_call(y2, xid, st2, g2, b2, tr, n_valid):
    m_pad, cp = y2.shape
    return pl.pallas_call(
        functools.partial(_bn_add_relu_id_kernel, inv_n=1.0 / n_valid),
        grid=(m_pad // tr,),
        in_specs=[
            pl.BlockSpec((tr, cp), lambda i: (i, 0)),
            pl.BlockSpec((tr, cp), lambda i: (i, 0)),
            pl.BlockSpec((8, cp), lambda i: (0, 0)),
            pl.BlockSpec((1, cp), lambda i: (0, 0)),
            pl.BlockSpec((1, cp), lambda i: (0, 0)),
        ],
        out_specs=pl.BlockSpec((tr, cp), lambda i: (i, 0)),
        out_shape=jax.ShapeDtypeStruct((m_pad, cp), jnp.float32),
        compiler_params=pltpu.CompilerParams(
            dimension_semantics=("parallel",), vmem_limit_bytes=VMEM_LIMIT),
        cost_estimate=pl.CostEstimate(
            flops=5 * m_pad * cp, transcendentals=cp,
            bytes_accessed=3 * m_pad * cp * 4 + 12 * cp * 4),
    )(y2, xid, st2, g2, b2)


# ---------------------------------------------------------------------------
# Plain-JAX glue (layout / patch extraction / parameter packing)
# ---------------------------------------------------------------------------
def _im2col(x_nhwc, k, stride, padding):
    """(N,H,W,C) -> (N*Ho*Wo, k*k*C) patch matrix (column order kh,kw,c), plus Ho, Wo."""
    n, h, w, c = x_nhwc.shape
    xp = jnp.pad(x_nhwc, ((0, 0), (padding, padding), (padding, padding), (0, 0)))
    ho = (h + 2 * padding - k) // stride + 1
    wo = (w + 2 * padding - k) // stride + 1
    cols = []
    for kh in range(k):
        for kw in range(k):
            cols.append(xp[:, kh:kh + (ho - 1) * stride + 1:stride,
                           kw:kw + (wo - 1) * stride + 1:stride, :])
    patches = jnp.stack(cols, axis=3)            # (N, Ho, Wo, k*k, C)
    return patches.reshape(n * ho * wo, k * k * c), ho, wo


def _pad2(x, rows, cols, dtype):
    r, c = x.shape
    return jnp.pad(x, ((0, rows - r), (0, cols - c))).astype(dtype)


def _w_to_mat(w, k_pad, c_pad):
    """(Cout,Cin,KH,KW) -> zero-padded (k_pad, c_pad) bf16 matrix matching _im2col order."""
    cout, cin, kh, kw = w.shape
    m = jnp.transpose(w, (2, 3, 1, 0)).reshape(kh * kw * cin, cout)
    return _pad2(m, k_pad, c_pad, jnp.bfloat16)


def _vec_pad(v, c_pad):
    return _pad2(v.reshape(1, -1), 1, c_pad, jnp.float32)


@functools.partial(jax.jit, static_argnames=("k", "padding", "stride", "skip", "row_tile"))
def resblock_forward(x_nchw, params, *, k, padding, stride, skip, row_tile=DEF_ROW_TILE):
    n, c_in, h, w = x_nchw.shape
    c_out = params["w1"].shape[0]
    cp = _round_up(c_out, LANE)
    x = jnp.transpose(x_nchw, (0, 2, 3, 1)).astype(jnp.float32)      # NHWC

    # ---- conv1 (+ BN1 batch-stat accumulation) ----
    p1, ho, wo = _im2col(x, k, stride, padding)
    m1 = n * ho * wo
    tr = min(_round_up(row_tile, 8), _round_up(m1, 8))
    m_pad = _round_up(m1, tr)
    k1p = _round_up(p1.shape[1], LANE)
    y1, st1 = _conv_stats_call(_pad2(p1, m_pad, k1p, jnp.bfloat16),
                               _w_to_mat(params["w1"], k1p, cp), tr, m1)

    # ---- BN1 + ReLU (normalize with global batch stats) ----
    a1 = _bn_relu_call(y1, st1, _vec_pad(params["g1"], cp),
                       _vec_pad(params["b1"], cp), tr, m1)
    a1_nhwc = a1[:m1, :c_out].reshape(n, ho, wo, c_out)   # drop row / lane padding

    # ---- conv2 patches (k, pad=1, stride=1) ----
    p2, _, _ = _im2col(a1_nhwc, k, 1, 1)
    k2p = _round_up(p2.shape[1], LANE)
    p2p = _pad2(p2, m_pad, k2p, jnp.bfloat16)
    w2m = _w_to_mat(params["w2"], k2p, cp)
    g2 = _vec_pad(params["g2"], cp)
    b2 = _vec_pad(params["b2"], cp)

    if skip:
        # 1x1 strided projection on the skip path: direct strided slice, no im2col.
        xs = x[:, ::stride, ::stride, :].reshape(-1, c_in)
        assert xs.shape[0] == m1, "skip path spatial dims must match the main path"
        cinp = _round_up(c_in, LANE)
        y2, ysk, st2, stsk = _conv2_skip_call(
            p2p, w2m, _pad2(xs, m_pad, cinp, jnp.bfloat16),
            _w_to_mat(params["ws"], cinp, cp), tr, m1)
        out = _bn_add_relu_skip_call(y2, ysk, st2, stsk, g2, b2,
                                     _vec_pad(params["gs"], cp),
                                     _vec_pad(params["bs"], cp), tr, m1)
    else:
        # identity skip (valid only when c_in == c_out and stride == 1, as in PyTorch)
        xid = _pad2(x.reshape(n * h * w, c_in), m_pad, cp, jnp.float32)
        y2, st2 = _conv_stats_call(p2p, w2m, tr, m1)
        out = _bn_add_relu_id_call(y2, xid, st2, g2, b2, tr, m1)

    out = out[:m1, :c_out].reshape(n, ho, wo, c_out)
    return jnp.transpose(out, (0, 3, 1, 2))                          # back to NCHW


# ---------------------------------------------------------------------------
# Deterministic parameter init (shapes per ResBlock.__init__)
# ---------------------------------------------------------------------------
def init_params(key, c_in, c_out, k, skip):
    k1, k2, k3 = jax.random.split(key, 3)
    params = {
        "w1": jax.random.normal(k1, (c_out, c_in, k, k), jnp.float32) * 0.1,
        "g1": jnp.ones((c_out,), jnp.float32),
        "b1": jnp.zeros((c_out,), jnp.float32),
        "w2": jax.random.normal(k2, (c_out, c_out, k, k), jnp.float32) * 0.1,
        "g2": jnp.ones((c_out,), jnp.float32),
        "b2": jnp.zeros((c_out,), jnp.float32),
    }
    if skip:
        params["ws"] = jax.random.normal(k3, (c_out, c_in, 1, 1), jnp.float32) * 0.1
        params["gs"] = jnp.ones((c_out,), jnp.float32)
        params["bs"] = jnp.zeros((c_out,), jnp.float32)
    return params


# ---------------------------------------------------------------------------
# Pure-JAX reference (f32 end to end) for sanity checking the Pallas result
# ---------------------------------------------------------------------------
def ref_resblock(x, params, *, k, padding, stride, skip):
    def conv(x_, w_, s, p):
        return jax.lax.conv_general_dilated(
            x_, w_, (s, s), [(p, p), (p, p)],
            dimension_numbers=("NCHW", "OIHW", "NCHW"))

    def bn(x_, g, b):
        mean = jnp.mean(x_, axis=(0, 2, 3), keepdims=True)
        var = jnp.mean((x_ - mean) ** 2, axis=(0, 2, 3), keepdims=True)
        return ((x_ - mean) * jax.lax.rsqrt(var + EPS) * g.reshape(1, -1, 1, 1)
                + b.reshape(1, -1, 1, 1))

    out = jax.nn.relu(bn(conv(x, params["w1"], stride, padding), params["g1"], params["b1"]))
    out = bn(conv(out, params["w2"], 1, 1), params["g2"], params["b2"])
    sk = bn(conv(x, params["ws"], stride, 0), params["gs"], params["bs"]) if skip else x
    return jax.nn.relu(out + sk)


if __name__ == "__main__":
    key = jax.random.PRNGKey(0)
    kx, kp1, kp2 = jax.random.split(key, 3)

    # Tolerance is a bit looser than a pure-f32 pipeline because the MXU inputs
    # (patches / weights / activations between stages) are intentionally bfloat16.
    ATOL = RTOL = 3e-2

    # Config A: downsampling block with projection skip (skip=True, stride=2).
    xA = jax.random.normal(kx, (2, 4, 16, 16), jnp.float32)
    pA = init_params(kp1, 4, 8, 3, True)
    outA = resblock_forward(xA, pA, k=3, padding=1, stride=2, skip=True)
    outA = jax.block_until_ready(outA)
    refA = ref_resblock(xA, pA, k=3, padding=1, stride=2, skip=True)
    assert outA.shape == (2, 8, 8, 8), outA.shape
    assert jnp.allclose(outA, refA, atol=ATOL, rtol=RTOL), "config A mismatch"

    # Config B: identity-skip block (skip=False, stride=1, c_in == c_out).
    # row_tile=96 -> 512 rows split into 6 tiles (last one partial), exercising the
    # cross-tile BN-statistic accumulation and the padded-row masking.
    xB = jax.random.normal(kx, (2, 8, 16, 16), jnp.float32)
    pB = init_params(kp2, 8, 8, 3, False)
    outB = resblock_forward(xB, pB, k=3, padding=1, stride=1, skip=False, row_tile=96)
    outB = jax.block_until_ready(outB)
    refB = ref_resblock(xB, pB, k=3, padding=1, stride=1, skip=False)
    assert outB.shape == (2, 8, 16, 16), outB.shape
    assert jnp.allclose(outB, refB, atol=ATOL, rtol=RTOL), "config B mismatch"

    print("KERNEL_OK")
</pallas_src>

<mosaic_0001>
module attributes {stable_mosaic.version = 11 : i64} {
  func.func @_conv_stats_kernel(%arg0: i32, %arg1: memref<128x128xbf16, #tpu.memory_space<vmem>>, %arg2: memref<128x128xbf16, #tpu.memory_space<vmem>>, %arg3: memref<128x128xf32, #tpu.memory_space<vmem>>, %arg4: memref<8x128xf32, #tpu.memory_space<vmem>>) attributes {dimension_semantics = [#tpu.dimension_semantics<arbitrary>], iteration_bounds = array<i64: 1>, scalar_prefetch = 0 : i64, scratch_operands = 0 : i64, tpu.core_type = #tpu.core_type<tc>, window_params = [{transform_indices = @transform_0, window_bounds = array<i64: 128, 128>}, {pipeline_mode = #tpu.pipeline_mode<synchronous>, transform_indices = @transform_1, window_bounds = array<i64: 128, 128>}, {transform_indices = @transform_2, window_bounds = array<i64: 128, 128>}, {pipeline_mode = #tpu.pipeline_mode<synchronous>, transform_indices = @transform_3, window_bounds = array<i64: 8, 128>}]} {
    %c0 = arith.constant 0 : index
    %c0_0 = arith.constant 0 : index
    %0 = vector.load %arg1[%c0, %c0_0] : memref<128x128xbf16, #tpu.memory_space<vmem>>, vector<128x128xbf16>
    %c0_1 = arith.constant 0 : index
    %c0_2 = arith.constant 0 : index
    %1 = vector.load %arg2[%c0_1, %c0_2] : memref<128x128xbf16, #tpu.memory_space<vmem>>, vector<128x128xbf16>
    %cst = arith.constant dense<0.000000e+00> : vector<128x128xf32>
    %2 = tpu.matmul %0, %1, %cst {dimension_numbers = #tpu.dot_dimension_numbers<[1], [0], [0], [1], [0, 0, 1, 1], [], []>} : vector<128x128xbf16>, vector<128x128xbf16>, vector<128x128xf32> -> vector<128x128xf32>
    %c0_3 = arith.constant 0 : index
    %c0_4 = arith.constant 0 : index
    %3 = vector.load %arg3[%c0_3, %c0_4] : memref<128x128xf32, #tpu.memory_space<vmem>>, vector<128x128xf32>
    tpu.vector_store %arg3[%c0_3, %c0_4], %2 {strides = array<i32>} : memref<128x128xf32, #tpu.memory_space<vmem>>, vector<128x128xf32>,
    %c0_i32 = arith.constant 0 : i32
    %4 = arith.cmpi eq, %arg0, %c0_i32 : i32
    %5 = arith.extui %4 : i1 to i32
    %c0_i32_5 = arith.constant 0 : i32
    %6 = arith.cmpi ne, %5, %c0_i32_5 : i32
    scf.if %6 {
      %cst_17 = arith.constant 0.000000e+00 : f32
      %26 = vector.broadcast %cst_17 : f32 to vector<8x128xf32>
      %c0_18 = arith.constant 0 : index
      %c0_19 = arith.constant 0 : index
      %27 = vector.load %arg4[%c0_18, %c0_19] : memref<8x128xf32, #tpu.memory_space<vmem>>, vector<8x128xf32>
      tpu.vector_store %arg4[%c0_18, %c0_19], %26 {strides = array<i32>} : memref<8x128xf32, #tpu.memory_space<vmem>>, vector<8x128xf32>,
    } else {
    }
    %c128_i32 = arith.constant 128 : i32
    %7 = arith.muli %arg0, %c128_i32 : i32
    %8 = tpu.iota {dimensions = array<i32: 0>} : vector<128x128xi32>
    %9 = vector.broadcast %7 : i32 to vector<128x128xi32>
    %10 = arith.addi %9, %8 : vector<128x128xi32>
    %c128_i32_6 = arith.constant 128 : i32
    %11 = vector.broadcast %c128_i32_6 : i32 to vector<128x128xi32>
    %12 = arith.cmpi slt, %10, %11 : vector<128x128xi32>
    %cst_7 = arith.constant 0.000000e+00 : f32
    %13 = vector.broadcast %cst_7 : f32 to vector<128x128xf32>
    %14 = arith.select %12, %2, %13 : vector<128x128xi1>, vector<128x128xf32>
    %c0_8 = arith.constant 0 : index
    %c0_9 = arith.constant 0 : index
    %15 = vector.load %arg4[%c0_8, %c0_9] : memref<8x128xf32, #tpu.memory_space<vmem>>, vector<1x128xf32>
    %cst_10 = arith.constant dense<0.000000e+00> : vector<128xf32>
    %16 = vector.multi_reduction <add>, %14, %cst_10 [0] : vector<128x128xf32> to vector<128xf32>
    %17 = vector.shape_cast %16 : vector<128xf32> to vector<1x128xf32>
    %18 = arith.addf %15, %17 : vector<1x128xf32>
    %c0_11 = arith.constant 0 : index
    %c0_12 = arith.constant 0 : index
    %19 = vector.load %arg4[%c0_11, %c0_12] : memref<8x128xf32, #tpu.memory_space<vmem>>, vector<1x128xf32>
    tpu.vector_store %arg4[%c0_11, %c0_12], %18 {strides = array<i32>} : memref<8x128xf32, #tpu.memory_space<vmem>>, vector<1x128xf32>,
    %c1 = arith.constant 1 : index
    %c0_13 = arith.constant 0 : index
    %20 = vector.load %arg4[%c1, %c0_13] : memref<8x128xf32, #tpu.memory_space<vmem>>, vector<1x128xf32>
    %21 = arith.mulf %14, %14 : vector<128x128xf32>
    %cst_14 = arith.constant dense<0.000000e+00> : vector<128xf32>
    %22 = vector.multi_reduction <add>, %21, %cst_14 [0] : vector<128x128xf32> to vector<128xf32>
    %23 = vector.shape_cast %22 : vector<128xf32> to vector<1x128xf32>
    %24 = arith.addf %20, %23 : vector<1x128xf32>
    %c1_15 = arith.constant 1 : index
    %c0_16 = arith.constant 0 : index
    %25 = vector.load %arg4[%c1_15, %c0_16] : memref<8x128xf32, #tpu.memory_space<vmem>>, vector<1x128xf32>
    tpu.vector_store %arg4[%c1_15, %c0_16], %24 {strides = array<i32>} : memref<8x128xf32, #tpu.memory_space<vmem>>, vector<1x128xf32>,
    return
  }
  func.func @transform_0(%arg0: i32) -> (i32, i32) {
    %c0_i32 = arith.constant 0 : i32
    %c0_i32_0 = arith.constant 0 : i32
    return %arg0, %c0_i32 : i32, i32
  }
  func.func @transform_1(%arg0: i32) -> (i32, i32) {
    %c0_i32 = arith.constant 0 : i32
    %c0_i32_0 = arith.constant 0 : i32
    %c0_i32_1 = arith.constant 0 : i32
    return %c0_i32, %c0_i32_0 : i32, i32
  }
  func.func @transform_2(%arg0: i32) -> (i32, i32) {
    %c0_i32 = arith.constant 0 : i32
    %c0_i32_0 = arith.constant 0 : i32
    return %arg0, %c0_i32 : i32, i32
  }
  func.func @transform_3(%arg0: i32) -> (i32, i32) {
    %c0_i32 = arith.constant 0 : i32
    %c0_i32_0 = arith.constant 0 : i32
    %c0_i32_1 = arith.constant 0 : i32
    return %c0_i32, %c0_i32_0 : i32, i32
  }
}

module attributes {stable_mosaic.version = 11 : i64} {
  func.func @_bn_relu_kernel(%arg0: i32, %arg1: memref<128x128xf32, #tpu.memory_space<vmem>>, %arg2: memref<8x128xf32, #tpu.memory_space<vmem>>, %arg3: memref<1x128xf32, #tpu.memory_space<vmem>>, %arg4: memref<1x128xf32, #tpu.memory_space<vmem>>, %arg5: memref<128x128xbf16, #tpu.memory_space<vmem>>) attributes {dimension_semantics = [#tpu.dimension_semantics<parallel>], iteration_bounds = array<i64: 1>, scalar_prefetch = 0 : i64, scratch_operands = 0 : i64, tpu.core_type = #tpu.core_type<tc>, window_params = [{transform_indices = @transform_0, window_bounds = array<i64: 128, 128>}, {pipeline_mode = #tpu.pipeline_mode<synchronous>, transform_indices = @transform_1, window_bounds = array<i64: 8, 128>}, {pipeline_mode = #tpu.pipeline_mode<synchronous>, transform_indices = @transform_2, window_bounds = array<i64: 1, 128>}, {pipeline_mode = #tpu.pipeline_mode<synchronous>, transform_indices = @transform_3, window_bounds = array<i64: 1, 128>}, {transform_indices = @transform_4, window_bounds = array<i64: 128, 128>}]} {
    %c0 = arith.constant 0 : index
    %c0_0 = arith.constant 0 : index
    %0 = vector.load %arg2[%c0, %c0_0] : memref<8x128xf32, #tpu.memory_space<vmem>>, vector<1x128xf32>
    %cst = arith.constant 7.812500e-03 : f32
    %1 = vector.broadcast %cst : f32 to vector<1x128xf32>
    %2 = arith.mulf %0, %1 : vector<1x128xf32>
    %c1 = arith.constant 1 : index
    %c0_1 = arith.constant 0 : index
    %3 = vector.load %arg2[%c1, %c0_1] : memref<8x128xf32, #tpu.memory_space<vmem>>, vector<1x128xf32>
    %cst_2 = arith.constant 7.812500e-03 : f32
    %4 = vector.broadcast %cst_2 : f32 to vector<1x128xf32>
    %5 = arith.mulf %3, %4 : vector<1x128xf32>
    %6 = arith.mulf %2, %2 : vector<1x128xf32>
    %7 = arith.subf %5, %6 : vector<1x128xf32>
    %c0_3 = arith.constant 0 : index
    %c0_4 = arith.constant 0 : index
    %8 = vector.load %arg3[%c0_3, %c0_4] : memref<1x128xf32, #tpu.memory_space<vmem>>, vector<1x128xf32>
    %cst_5 = arith.constant 9.99999974E-6 : f32
    %9 = vector.broadcast %cst_5 : f32 to vector<1x128xf32>
    %10 = arith.addf %7, %9 : vector<1x128xf32>
    %11 = math.rsqrt %10 : vector<1x128xf32>
    %12 = arith.mulf %8, %11 : vector<1x128xf32>
    %c0_6 = arith.constant 0 : index
    %c0_7 = arith.constant 0 : index
    %13 = vector.load %arg4[%c0_6, %c0_7] : memref<1x128xf32, #tpu.memory_space<vmem>>, vector<1x128xf32>
    %14 = arith.mulf %2, %12 : vector<1x128xf32>
    %15 = arith.subf %13, %14 : vector<1x128xf32>
    %c0_8 = arith.constant 0 : index
    %c0_9 = arith.constant 0 : index
    %16 = vector.load %arg1[%c0_8, %c0_9] : memref<128x128xf32, #tpu.memory_space<vmem>>, vector<128x128xf32>
    %17 = vector.broadcast %12 : vector<1x128xf32> to vector<128x128xf32>
    %18 = arith.mulf %16, %17 : vector<128x128xf32>
    %19 = vector.broadcast %15 : vector<1x128xf32> to vector<128x128xf32>
    %20 = arith.addf %18, %19 : vector<128x128xf32>
    %cst_10 = arith.constant 0.000000e+00 : f32
    %21 = vector.broadcast %cst_10 : f32 to vector<128x128xf32>
    %22 = arith.maximumf %20, %21 : vector<128x128xf32>
    %23 = arith.truncf %22 : vector<128x128xf32> to vector<128x128xbf16>
    %c0_11 = arith.constant 0 : index
    %c0_12 = arith.constant 0 : index
    %24 = vector.load %arg5[%c0_11, %c0_12] : memref<128x128xbf16, #tpu.memory_space<vmem>>, vector<128x128xbf16>
    tpu.vector_store %arg5[%c0_11, %c0_12], %23 {strides = array<i32>} : memref<128x128xbf16, #tpu.memory_space<vmem>>, vector<128x128xbf16>,
    return
  }
  func.func @transform_0(%arg0: i32) -> (i32, i32) {
    %c0_i32 = arith.constant 0 : i32
    %c0_i32_0 = arith.constant 0 : i32
    return %arg0, %c0_i32 : i32, i32
  }
  func.func @transform_1(%arg0: i32) -> (i32, i32) {
    %c0_i32 = arith.constant 0 : i32
    %c0_i32_0 = arith.constant 0 : i32
    %c0_i32_1 = arith.constant 0 : i32
    return %c0_i32, %c0_i32_0 : i32, i32
  }
  func.func @transform_2(%arg0: i32) -> (i32, i32) {
    %c0_i32 = arith.constant 0 : i32
    %c0_i32_0 = arith.constant 0 : i32
    %c0_i32_1 = arith.constant 0 : i32
    return %c0_i32, %c0_i32_0 : i32, i32
  }
  func.func @transform_3(%arg0: i32) -> (i32, i32) {
    %c0_i32 = arith.constant 0 : i32
    %c0_i32_0 = arith.constant 0 : i32
    %c0_i32_1 = arith.constant 0 : i32
    return %c0_i32, %c0_i32_0 : i32, i32
  }
  func.func @transform_4(%arg0: i32) -> (i32, i32) {
    %c0_i32 = arith.constant 0 : i32
    %c0_i32_0 = arith.constant 0 : i32
    return %arg0, %c0_i32 : i32, i32
  }
}

module attributes {stable_mosaic.version = 11 : i64} {
  func.func @_bn_add_relu_skip_kernel(%arg0: i32, %arg1: memref<128x128xf32, #tpu.memory_space<vmem>>, %arg2: memref<128x128xf32, #tpu.memory_space<vmem>>, %arg3: memref<8x128xf32, #tpu.memory_space<vmem>>, %arg4: memref<8x128xf32, #tpu.memory_space<vmem>>, %arg5: memref<1x128xf32, #tpu.memory_space<vmem>>, %arg6: memref<1x128xf32, #tpu.memory_space<vmem>>, %arg7: memref<1x128xf32, #tpu.memory_space<vmem>>, %arg8: memref<1x128xf32, #tpu.memory_space<vmem>>, %arg9: memref<128x128xf32, #tpu.memory_space<vmem>>) attributes {dimension_semantics = [#tpu.dimension_semantics<parallel>], iteration_bounds = array<i64: 1>, scalar_prefetch = 0 : i64, scratch_operands = 0 : i64, tpu.core_type = #tpu.core_type<tc>, window_params = [{transform_indices = @transform_0, window_bounds = array<i64: 128, 128>}, {transform_indices = @transform_1, window_bounds = array<i64: 128, 128>}, {pipeline_mode = #tpu.pipeline_mode<synchronous>, transform_indices = @transform_2, window_bounds = array<i64: 8, 128>}, {pipeline_mode = #tpu.pipeline_mode<synchronous>, transform_indices = @transform_3, window_bounds = array<i64: 8, 128>}, {pipeline_mode = #tpu.pipeline_mode<synchronous>, transform_indices = @transform_4, window_bounds = array<i64: 1, 128>}, {pipeline_mode = #tpu.pipeline_mode<synchronous>, transform_indices = @transform_5, window_bounds = array<i64: 1, 128>}, {pipeline_mode = #tpu.pipeline_mode<synchronous>, transform_indices = @transform_6, window_bounds = array<i64: 1, 128>}, {pipeline_mode = #tpu.pipeline_mode<synchronous>, transform_indices = @transform_7, window_bounds = array<i64: 1, 128>}, {transform_indices = @transform_8, window_bounds = array<i64: 128, 128>}]} {
    %c0 = arith.constant 0 : index
    %c0_0 = arith.constant 0 : index
    %0 = vector.load %arg3[%c0, %c0_0] : memref<8x128xf32, #tpu.memory_space<vmem>>, vector<1x128xf32>
    %cst = arith.constant 7.812500e-03 : f32
    %1 = vector.broadcast %cst : f32 to vector<1x128xf32>
    %2 = arith.mulf %0, %1 : vector<1x128xf32>
    %c1 = arith.constant 1 : index
    %c0_1 = arith.constant 0 : index
    %3 = vector.load %arg3[%c1, %c0_1] : memref<8x128xf32, #tpu.memory_space<vmem>>, vector<1x128xf32>
    %cst_2 = arith.constant 7.812500e-03 : f32
    %4 = vector.broadcast %cst_2 : f32 to vector<1x128xf32>
    %5 = arith.mulf %3, %4 : vector<1x128xf32>
    %6 = arith.mulf %2, %2 : vector<1x128xf32>
    %7 = arith.subf %5, %6 : vector<1x128xf32>
    %c0_3 = arith.constant 0 : index
    %c0_4 = arith.constant 0 : index
    %8 = vector.load %arg5[%c0_3, %c0_4] : memref<1x128xf32, #tpu.memory_space<vmem>>, vector<1x128xf32>
    %cst_5 = arith.constant 9.99999974E-6 : f32
    %9 = vector.broadcast %cst_5 : f32 to vector<1x128xf32>
    %10 = arith.addf %7, %9 : vector<1x128xf32>
    %11 = math.rsqrt %10 : vector<1x128xf32>
    %12 = arith.mulf %8, %11 : vector<1x128xf32>
    %c0_6 = arith.constant 0 : index
    %c0_7 = arith.constant 0 : index
    %13 = vector.load %arg6[%c0_6, %c0_7] : memref<1x128xf32, #tpu.memory_space<vmem>>, vector<1x128xf32>
    %14 = arith.mulf %2, %12 : vector<1x128xf32>
    %15 = arith.subf %13, %14 : vector<1x128xf32>
    %c0_8 = arith.constant 0 : index
    %c0_9 = arith.constant 0 : index
    %16 = vector.load %arg4[%c0_8, %c0_9] : memref<8x128xf32, #tpu.memory_space<vmem>>, vector<1x128xf32>
    %cst_10 = arith.constant 7.812500e-03 : f32
    %17 = vector.broadcast %cst_10 : f32 to vector<1x128xf32>
    %18 = arith.mulf %16, %17 : vector<1x128xf32>
    %c1_11 = arith.constant 1 : index
    %c0_12 = arith.constant 0 : index
    %19 = vector.load %arg4[%c1_11, %c0_12] : memref<8x128xf32, #tpu.memory_space<vmem>>, vector<1x128xf32>
    %cst_13 = arith.constant 7.812500e-03 : f32
    %20 = vector.broadcast %cst_13 : f32 to vector<1x128xf32>
    %21 = arith.mulf %19, %20 : vector<1x128xf32>
    %22 = arith.mulf %18, %18 : vector<1x128xf32>
    %23 = arith.subf %21, %22 : vector<1x128xf32>
    %c0_14 = arith.constant 0 : index
    %c0_15 = arith.constant 0 : index
    %24 = vector.load %arg7[%c0_14, %c0_15] : memref<1x128xf32, #tpu.memory_space<vmem>>, vector<1x128xf32>
    %cst_16 = arith.constant 9.99999974E-6 : f32
    %25 = vector.broadcast %cst_16 : f32 to vector<1x128xf32>
    %26 = arith.addf %23, %25 : vector<1x128xf32>
    %27 = math.rsqrt %26 : vector<1x128xf32>
    %28 = arith.mulf %24, %27 : vector<1x128xf32>
    %c0_17 = arith.constant 0 : index
    %c0_18 = arith.constant 0 : index
    %29 = vector.load %arg8[%c0_17, %c0_18] : memref<1x128xf32, #tpu.memory_space<vmem>>, vector<1x128xf32>
    %30 = arith.mulf %18, %28 : vector<1x128xf32>
    %31 = arith.subf %29, %30 : vector<1x128xf32>
    %c0_19 = arith.constant 0 : index
    %c0_20 = arith.constant 0 : index
    %32 = vector.load %arg1[%c0_19, %c0_20] : memref<128x128xf32, #tpu.memory_space<vmem>>, vector<128x128xf32>
    %33 = vector.broadcast %12 : vector<1x128xf32> to vector<128x128xf32>
    %34 = arith.mulf %32, %33 : vector<128x128xf32>
    %35 = vector.broadcast %15 : vector<1x128xf32> to vector<128x128xf32>
    %36 = arith.addf %34, %35 : vector<128x128xf32>
    %c0_21 = arith.constant 0 : index
    %c0_22 = arith.constant 0 : index
    %37 = vector.load %arg2[%c0_21, %c0_22] : memref<128x128xf32, #tpu.memory_space<vmem>>, vector<128x128xf32>
    %38 = vector.broadcast %28 : vector<1x128xf32> to vector<128x128xf32>
    %39 = arith.mulf %37, %38 : vector<128x128xf32>
    %40 = vector.broadcast %31 : vector<1x128xf32> to vector<128x128xf32>
    %41 = arith.addf %39, %40 : vector<128x128xf32>
    %42 = arith.addf %36, %41 : vector<128x128xf32>
    %cst_23 = arith.constant 0.000000e+00 : f32
    %43 = vector.broadcast %cst_23 : f32 to vector<128x128xf32>
    %44 = arith.maximumf %42, %43 : vector<128x128xf32>
    %c0_24 = arith.constant 0 : index
    %c0_25 = arith.constant 0 : index
    %45 = vector.load %arg9[%c0_24, %c0_25] : memref<128x128xf32, #tpu.memory_space<vmem>>, vector<128x128xf32>
    tpu.vector_store %arg9[%c0_24, %c0_25], %44 {strides = array<i32>} : memref<128x128xf32, #tpu.memory_space<vmem>>, vector<128x128xf32>,
    return
  }
  func.func @transform_0(%arg0: i32) -> (i32, i32) {
    %c0_i32 = arith.constant 0 : i32
    %c0_i32_0 = arith.constant 0 : i32
    return %arg0, %c0_i32 : i32, i32
  }
  func.func @transform_1(%arg0: i32) -> (i32, i32) {
    %c0_i32 = arith.constant 0 : i32
    %c0_i32_0 = arith.constant 0 : i32
    return %arg0, %c0_i32 : i32, i32
  }
  func.func @transform_2(%arg0: i32) -> (i32, i32) {
    %c0_i32 = arith.constant 0 : i32
    %c0_i32_0 = arith.constant 0 : i32
    %c0_i32_1 = arith.constant 0 : i32
    return %c0_i32, %c0_i32_0 : i32, i32
  }
  func.func @transform_3(%arg0: i32) -> (i32, i32) {
    %c0_i32 = arith.constant 0 : i32
    %c0_i32_0 = arith.constant 0 : i32
    %c0_i32_1 = arith.constant 0 : i32
    return %c0_i32, %c0_i32_0 : i32, i32
  }
  func.func @transform_4(%arg0: i32) -> (i32, i32) {
    %c0_i32 = arith.constant 0 : i32
    %c0_i32_0 = arith.constant 0 : i32
    %c0_i32_1 = arith.constant 0 : i32
    return %c0_i32, %c0_i32_0 : i32, i32
  }
  func.func @transform_5(%arg0: i32) -> (i32, i32) {
    %c0_i32 = arith.constant 0 : i32
    %c0_i32_0 = arith.constant 0 : i32
    %c0_i32_1 = arith.constant 0 : i32
    return %c0_i32, %c0_i32_0 : i32, i32
  }
  func.func @transform_6(%arg0: i32) -> (i32, i32) {
    %c0_i32 = arith.constant 0 : i32
    %c0_i32_0 = arith.constant 0 : i32
    %c0_i32_1 = arith.constant 0 : i32
    return %c0_i32, %c0_i32_0 : i32, i32
  }
  func.func @transform_7(%arg0: i32) -> (i32, i32) {
    %c0_i32 = arith.constant 0 : i32
    %c0_i32_0 = arith.constant 0 : i32
    %c0_i32_1 = arith.constant 0 : i32
    return %c0_i32, %c0_i32_0 : i32, i32
  }
  func.func @transform_8(%arg0: i32) -> (i32, i32) {
    %c0_i32 = arith.constant 0 : i32
    %c0_i32_0 = arith.constant 0 : i32
    return %arg0, %c0_i32 : i32, i32
  }
}

module attributes {stable_mosaic.version = 11 : i64} {
  func.func @_conv2_skip_stats_kernel(%arg0: i32, %arg1: memref<128x128xbf16, #tpu.memory_space<vmem>>, %arg2: memref<128x128xbf16, #tpu.memory_space<vmem>>, %arg3: memref<128x128xbf16, #tpu.memory_space<vmem>>, %arg4: memref<128x128xbf16, #tpu.memory_space<vmem>>, %arg5: memref<128x128xf32, #tpu.memory_space<vmem>>, %arg6: memref<128x128xf32, #tpu.memory_space<vmem>>, %arg7: memref<8x128xf32, #tpu.memory_space<vmem>>, %arg8: memref<8x128xf32, #tpu.memory_space<vmem>>) attributes {dimension_semantics = [#tpu.dimension_semantics<arbitrary>], iteration_bounds = array<i64: 1>, scalar_prefetch = 0 : i64, scratch_operands = 0 : i64, tpu.core_type = #tpu.core_type<tc>, window_params = [{transform_indices = @transform_0, window_bounds = array<i64: 128, 128>}, {pipeline_mode = #tpu.pipeline_mode<synchronous>, transform_indices = @transform_1, window_bounds = array<i64: 128, 128>}, {transform_indices = @transform_2, window_bounds = array<i64: 128, 128>}, {pipeline_mode = #tpu.pipeline_mode<synchronous>, transform_indices = @transform_3, window_bounds = array<i64: 128, 128>}, {transform_indices = @transform_4, window_bounds = array<i64: 128, 128>}, {transform_indices = @transform_5, window_bounds = array<i64: 128, 128>}, {pipeline_mode = #tpu.pipeline_mode<synchronous>, transform_indices = @transform_6, window_bounds = array<i64: 8, 128>}, {pipeline_mode = #tpu.pipeline_mode<synchronous>, transform_indices = @transform_7, window_bounds = array<i64: 8, 128>}]} {
    %c0 = arith.constant 0 : index
    %c0_0 = arith.constant 0 : index
    %0 = vector.load %arg1[%c0, %c0_0] : memref<128x128xbf16, #tpu.memory_space<vmem>>, vector<128x128xbf16>
    %c0_1 = arith.constant 0 : index
    %c0_2 = arith.constant 0 : index
    %1 = vector.load %arg2[%c0_1, %c0_2] : memref<128x128xbf16, #tpu.memory_space<vmem>>, vector<128x128xbf16>
    %cst = arith.constant dense<0.000000e+00> : vector<128x128xf32>
    %2 = tpu.matmul %0, %1, %cst {dimension_numbers = #tpu.dot_dimension_numbers<[1], [0], [0], [1], [0, 0, 1, 1], [], []>} : vector<128x128xbf16>, vector<128x128xbf16>, vector<128x128xf32> -> vector<128x128xf32>
    %c0_3 = arith.constant 0 : index
    %c0_4 = arith.constant 0 : index
    %3 = vector.load %arg3[%c0_3, %c0_4] : memref<128x128xbf16, #tpu.memory_space<vmem>>, vector<128x128xbf16>
    %c0_5 = arith.constant 0 : index
    %c0_6 = arith.constant 0 : index
    %4 = vector.load %arg4[%c0_5, %c0_6] : memref<128x128xbf16, #tpu.memory_space<vmem>>, vector<128x128xbf16>
    %cst_7 = arith.constant dense<0.000000e+00> : vector<128x128xf32>
    %5 = tpu.matmul %3, %4, %cst_7 {dimension_numbers = #tpu.dot_dimension_numbers<[1], [0], [0], [1], [0, 0, 1, 1], [], []>} : vector<128x128xbf16>, vector<128x128xbf16>, vector<128x128xf32> -> vector<128x128xf32>
    %c0_8 = arith.constant 0 : index
    %c0_9 = arith.constant 0 : index
    %6 = vector.load %arg5[%c0_8, %c0_9] : memref<128x128xf32, #tpu.memory_space<vmem>>, vector<128x128xf32>
    tpu.vector_store %arg5[%c0_8, %c0_9], %2 {strides = array<i32>} : memref<128x128xf32, #tpu.memory_space<vmem>>, vector<128x128xf32>,
    %c0_10 = arith.constant 0 : index
    %c0_11 = arith.constant 0 : index
    %7 = vector.load %arg6[%c0_10, %c0_11] : memref<128x128xf32, #tpu.memory_space<vmem>>, vector<128x128xf32>
    tpu.vector_store %arg6[%c0_10, %c0_11], %5 {strides = array<i32>} : memref<128x128xf32, #tpu.memory_space<vmem>>, vector<128x128xf32>,
    %c0_i32 = arith.constant 0 : i32
    %8 = arith.cmpi eq, %arg0, %c0_i32 : i32
    %9 = arith.extui %8 : i1 to i32
    %c0_i32_12 = arith.constant 0 : i32
    %10 = arith.cmpi ne, %9, %c0_i32_12 : i32
    scf.if %10 {
      %cst_35 = arith.constant 0.000000e+00 : f32
      %43 = vector.broadcast %cst_35 : f32 to vector<8x128xf32>
      %c0_36 = arith.constant 0 : index
      %c0_37 = arith.constant 0 : index
      %44 = vector.load %arg7[%c0_36, %c0_37] : memref<8x128xf32, #tpu.memory_space<vmem>>, vector<8x128xf32>
      tpu.vector_store %arg7[%c0_36, %c0_37], %43 {strides = array<i32>} : memref<8x128xf32, #tpu.memory_space<vmem>>, vector<8x128xf32>,
      %cst_38 = arith.constant 0.000000e+00 : f32
      %45 = vector.broadcast %cst_38 : f32 to vector<8x128xf32>
      %c0_39 = arith.constant 0 : index
      %c0_40 = arith.constant 0 : index
      %46 = vector.load %arg8[%c0_39, %c0_40] : memref<8x128xf32, #tpu.memory_space<vmem>>, vector<8x128xf32>
      tpu.vector_store %arg8[%c0_39, %c0_40], %45 {strides = array<i32>} : memref<8x128xf32, #tpu.memory_space<vmem>>, vector<8x128xf32>,
    } else {
    }
    %c128_i32 = arith.constant 128 : i32
    %11 = arith.muli %arg0, %c128_i32 : i32
    %12 = tpu.iota {dimensions = array<i32: 0>} : vector<128x128xi32>
    %13 = vector.broadcast %11 : i32 to vector<128x128xi32>
    %14 = arith.addi %13, %12 : vector<128x128xi32>
    %c128_i32_13 = arith.constant 128 : i32
    %15 = vector.broadcast %c128_i32_13 : i32 to vector<128x128xi32>
    %16 = arith.cmpi slt, %14, %15 : vector<128x128xi32>
    %cst_14 = arith.constant 0.000000e+00 : f32
    %17 = vector.broadcast %cst_14 : f32 to vector<128x128xf32>
    %18 = arith.select %16, %2, %17 : vector<128x128xi1>, vector<128x128xf32>
    %cst_15 = arith.constant 0.000000e+00 : f32
    %19 = vector.broadcast %cst_15 : f32 to vector<128x128xf32>
    %20 = arith.select %16, %5, %19 : vector<128x128xi1>, vector<128x128xf32>
    %c0_16 = arith.constant 0 : index
    %c0_17 = arith.constant 0 : index
    %21 = vector.load %arg7[%c0_16, %c0_17] : memref<8x128xf32, #tpu.memory_space<vmem>>, vector<1x128xf32>
    %cst_18 = arith.constant dense<0.000000e+00> : vector<128xf32>
    %22 = vector.multi_reduction <add>, %18, %cst_18 [0] : vector<128x128xf32> to vector<128xf32>
    %23 = vector.shape_cast %22 : vector<128xf32> to vector<1x128xf32>
    %24 = arith.addf %21, %23 : vector<1x128xf32>
    %c0_19 = arith.constant 0 : index
    %c0_20 = arith.constant 0 : index
    %25 = vector.load %arg7[%c0_19, %c0_20] : memref<8x128xf32, #tpu.memory_space<vmem>>, vector<1x128xf32>
    tpu.vector_store %arg7[%c0_19, %c0_20], %24 {strides = array<i32>} : memref<8x128xf32, #tpu.memory_space<vmem>>, vector<1x128xf32>,
    %c1 = arith.constant 1 : index
    %c0_21 = arith.constant 0 : index
    %26 = vector.load %arg7[%c1, %c0_21] : memref<8x128xf32, #tpu.memory_space<vmem>>, vector<1x128xf32>
    %27 = arith.mulf %18, %18 : vector<128x128xf32>
    %cst_22 = arith.constant dense<0.000000e+00> : vector<128xf32>
    %28 = vector.multi_reduction <add>, %27, %cst_22 [0] : vector<128x128xf32> to vector<128xf32>
    %29 = vector.shape_cast %28 : vector<128xf32> to vector<1x128xf32>
    %30 = arith.addf %26, %29 : vector<1x128xf32>
    %c1_23 = arith.constant 1 : index
    %c0_24 = arith.constant 0 : index
    %31 = vector.load %arg7[%c1_23, %c0_24] : memref<8x128xf32, #tpu.memory_space<vmem>>, vector<1x128xf32>
    tpu.vector_store %arg7[%c1_23, %c0_24], %30 {strides = array<i32>} : memref<8x128xf32, #tpu.memory_space<vmem>>, vector<1x128xf32>,
    %c0_25 = arith.constant 0 : index
    %c0_26 = arith.constant 0 : index
    %32 = vector.load %arg8[%c0_25, %c0_26] : memref<8x128xf32, #tpu.memory_space<vmem>>, vector<1x128xf32>
    %cst_27 = arith.constant dense<0.000000e+00> : vector<128xf32>
    %33 = vector.multi_reduction <add>, %20, %cst_27 [0] : vector<128x128xf32> to vector<128xf32>
    %34 = vector.shape_cast %33 : vector<128xf32> to vector<1x128xf32>
    %35 = arith.addf %32, %34 : vector<1x128xf32>
    %c0_28 = arith.constant 0 : index
    %c0_29 = arith.constant 0 : index
    %36 = vector.load %arg8[%c0_28, %c0_29] : memref<8x128xf32, #tpu.memory_space<vmem>>, vector<1x128xf32>
    tpu.vector_store %arg8[%c0_28, %c0_29], %35 {strides = array<i32>} : memref<8x128xf32, #tpu.memory_space<vmem>>, vector<1x128xf32>,
    %c1_30 = arith.constant 1 : index
    %c0_31 = arith.constant 0 : index
    %37 = vector.load %arg8[%c1_30, %c0_31] : memref<8x128xf32, #tpu.memory_space<vmem>>, vector<1x128xf32>
    %38 = arith.mulf %20, %20 : vector<128x128xf32>
    %cst_32 = arith.constant dense<0.000000e+00> : vector<128xf32>
    %39 = vector.multi_reduction <add>, %38, %cst_32 [0] : vector<128x128xf32> to vector<128xf32>
    %40 = vector.shape_cast %39 : vector<128xf32> to vector<1x128xf32>
    %41 = arith.addf %37, %40 : vector<1x128xf32>
    %c1_33 = arith.constant 1 : index
    %c0_34 = arith.constant 0 : index
    %42 = vector.load %arg8[%c1_33, %c0_34] : memref<8x128xf32, #tpu.memory_space<vmem>>, vector<1x128xf32>
    tpu.vector_store %arg8[%c1_33, %c0_34], %41 {strides = array<i32>} : memref<8x128xf32, #tpu.memory_space<vmem>>, vector<1x128xf32>,
    return
  }
  func.func @transform_0(%arg0: i32) -> (i32, i32) {
    %c0_i32 = arith.constant 0 : i32
    %c0_i32_0 = arith.constant 0 : i32
    return %arg0, %c0_i32 : i32, i32
  }
  func.func @transform_1(%arg0: i32) -> (i32, i32) {
    %c0_i32 = arith.constant 0 : i32
    %c0_i32_0 = arith.constant 0 : i32
    %c0_i32_1 = arith.constant 0 : i32
    return %c0_i32, %c0_i32_0 : i32, i32
  }
  func.func @transform_2(%arg0: i32) -> (i32, i32) {
    %c0_i32 = arith.constant 0 : i32
    %c0_i32_0 = arith.constant 0 : i32
    return %arg0, %c0_i32 : i32, i32
  }
  func.func @transform_3(%arg0: i32) -> (i32, i32) {
    %c0_i32 = arith.constant 0 : i32
    %c0_i32_0 = arith.constant 0 : i32
    %c0_i32_1 = arith.constant 0 : i32
    return %c0_i32, %c0_i32_0 : i32, i32
  }
  func.func @transform_4(%arg0: i32) -> (i32, i32) {
    %c0_i32 = arith.constant 0 : i32
    %c0_i32_0 = arith.constant 0 : i32
    return %arg0, %c0_i32 : i32, i32
  }
  func.func @transform_5(%arg0: i32) -> (i32, i32) {
    %c0_i32 = arith.constant 0 : i32
    %c0_i32_0 = arith.constant 0 : i32
    return %arg0, %c0_i32 : i32, i32
  }
  func.func @transform_6(%arg0: i32) -> (i32, i32) {
    %c0_i32 = arith.constant 0 : i32
    %c0_i32_0 = arith.constant 0 : i32
    %c0_i32_1 = arith.constant 0 : i32
    return %c0_i32, %c0_i32_0 : i32, i32
  }
  func.func @transform_7(%arg0: i32) -> (i32, i32) {
    %c0_i32 = arith.constant 0 : i32
    %c0_i32_0 = arith.constant 0 : i32
    %c0_i32_1 = arith.constant 0 : i32
    return %c0_i32, %c0_i32_0 : i32, i32
  }
}

</mosaic_0001>

<bundles_post_ra>
// kernel: resblock_forward.5
= control target key start
LH: loop header
LB: loop body
LE: loop exit
PB: predicated region body
PF: predicated region fallthrough
CT: control target
= control target key end

     0   :  { %9 = vsyncpa [#allocation3], 0  ;;  %s582_s0 = inlined_call_operand.hbm [shape: f32[128,128], index: 0, kind: input, shape index: {}]   ;;  %s583_s1 = inlined_call_operand.hbm [shape: f32[8,128], index: 1, kind: input, shape index: {}]   ;;  %s584_s2 = inlined_call_operand.hbm [shape: f32[1,128], index: 2, kind: input, shape index: {}]   ;;  %s585_s3 = inlined_call_operand.hbm [shape: f32[1,128], index: 3, kind: input, shape index: {}]   ;;  %s586_s4 = inlined_call_operand.hbm [shape: bf16[128,128], index: 4, kind: output, shape index: {}]  }
   0x1   :  { %10 = vsyncpa [#allocation6], 0 }
   0x2   :  { %11 = vsyncpa [#allocation9], 0 }
   0x3   :  { %12 = vsyncpa [#allocation4], 0  ;;  %s463_s15 = smov [#allocation5]   ;;  %s464_s17 = smov [#allocation2]  }
   0x4   :  { %s31_s16 = sshll.u32 %s463_s15, 4  ;;  %s18_s18 = sshll.u32 %s464_s17, 4  ;;  %s32_s16 = int_to_ptr.vmem [resolvable:$true] %s31_s16  ;;  %s497_s18 = int_to_ptr.vmem [resolvable:$true] %s18_s18 }
   0x5   :  { %s345_s21 = scalar_lea.hbm %s583_s1, 128 }
   0x6   :  { %p346_p0 = scmp.ne.s32.totalorder %s583_s1, %s345_s21  ;;  %p349_p1 = scmp.lt.u32.totalorder %s345_s21, %s583_s1 }
   0x8   :  { %p351_p2 = pnand %p349_p1, %p346_p0 }
   0xa   :  { %354 = shalt.err (!%p351_p2)
}
   0xb   :  { %s355_s26 = scalar_lea.vmem %s32_s16, 128  ;;  %p360_p4 = scmp.lt.s32.totalorder %s32_s16, %s32_s16 }
   0xc   :  { %p356_p3 = scmp.ne.s32.totalorder %s32_s16, %s355_s26  ;;  %p361_p5 = scmp.lt.s32.totalorder %s355_s26, %s355_s26 }
   0xe   :  { %p362_p6 = por %p361_p5, %p360_p4 }
  0x10   :  { %p363_p7 = pnand %p362_p6, %p356_p3 }
  0x12   :  { %366 = shalt.err (!%p363_p7)
}
  0x13   :  { %34 = dma.hbm_to_vmem [thread:$0]  %s583_s1, 128, %s32_s16, [#allocation6]  }
  0x14   :  { %s367_s5 = scalar_lea.hbm %s582_s0, 2048 }
  0x15   :  { %p368_p8 = scmp.ne.s32.totalorder %s582_s0, %s367_s5  ;;  %p371_p9 = scmp.lt.u32.totalorder %s367_s5, %s582_s0 }
  0x17   :  { %p373_p10 = pnand %p371_p9, %p368_p8 }
  0x19   :  { %376 = shalt.err (!%p373_p10)
}
  0x1a   :  { %s377_s10 = scalar_lea.vmem %s497_s18, 2048  ;;  %p382_p12 = scmp.lt.s32.totalorder %s497_s18, %s497_s18 }
  0x1b   :  { %p378_p11 = scmp.ne.s32.totalorder %s497_s18, %s377_s10  ;;  %p383_p13 = scmp.lt.s32.totalorder %s377_s10, %s377_s10 }
  0x1d   :  { %p384_p0 = por %p383_p13, %p382_p12 }
  0x1f   :  { %p385_p1 = pnand %p384_p0, %p378_p11 }
  0x21   :  { %388 = shalt.err (!%p385_p1)
}
  0x22   :  { %s465_s1 = smov 128   ;;  %s466_s11 = smov 8  }
  0x23   :  { %24 = dma.hbm_to_vmem [thread:$0]  %s582_s0, 2048, %s497_s18, [#allocation3], %s465_s1, %s465_s1, %s466_s11  }
  0x24   :  { %s467_s14 = smov [#allocation7]   ;;  %s468_s16 = smov [#allocation8]  }
  0x25   :  { %s41_s15 = sshll.u32 %s467_s14, 4  ;;  %s51_s17 = sshll.u32 %s468_s16, 4  ;;  %s42_s15 = int_to_ptr.vmem [resolvable:$true] %s41_s15  ;;  %s52_s17 = int_to_ptr.vmem [resolvable:$true] %s51_s17 }
  0x26   :  { %s389_s21 = scalar_lea.hbm %s584_s2, 16 }
  0x27   :  { %p390_p2 = scmp.ne.s32.totalorder %s584_s2, %s389_s21  ;;  %p393_p3 = scmp.lt.u32.totalorder %s389_s21, %s584_s2 }
  0x29   :  { %p395_p4 = pnand %p393_p3, %p390_p2 }
  0x2b   :  { %398 = shalt.err (!%p395_p4)
}
  0x2c   :  { %s399_s0 = scalar_lea.vmem %s42_s15, 16  ;;  %s403_s18 = scalar_lea.vmem %s42_s15, 32 }
  0x2d   :  { %p400_p5 = scmp.ne.s32.totalorder %s42_s15, %s399_s0  ;;  %p404_p6 = scmp.lt.s32.totalorder %s42_s15, %s42_s15 }
  0x2e   :  { %p405_p7 = scmp.lt.s32.totalorder %s403_s18, %s399_s0 }
  0x30   :  { %p406_p8 = por %p405_p7, %p404_p6 }
  0x32   :  { %p407_p9 = pnand %p406_p8, %p400_p5 }
  0x34   :  { %410 = shalt.err (!%p407_p9)
}
  0x35   :  { %44 = dma.hbm_to_vmem [thread:$0]  %s584_s2, 16, %s42_s15, [#allocation6]  }
  0x36   :  { %s411_s30 = scalar_lea.hbm %s585_s3, 16 }
  0x37   :  { %p412_p10 = scmp.ne.s32.totalorder %s585_s3, %s411_s30  ;;  %p415_p11 = scmp.lt.u32.totalorder %s411_s30, %s585_s3 }
  0x39   :  { %p417_p12 = pnand %p415_p11, %p412_p10 }
  0x3b   :  { %420 = shalt.err (!%p417_p12)
}
  0x3c   :  { %s421_s9 = scalar_lea.vmem %s52_s17, 16  ;;  %s425_s10 = scalar_lea.vmem %s52_s17, 32 }
  0x3d   :  { %p422_p13 = scmp.ne.s32.totalorder %s52_s17, %s421_s9  ;;  %p426_p0 = scmp.lt.s32.totalorder %s52_s17, %s52_s17 }
  0x3e   :  { %p427_p1 = scmp.lt.s32.totalorder %s425_s10, %s421_s9 }
  0x40   :  { %p428_p2 = por %p427_p1, %p426_p0 }
  0x42   :  { %p429_p3 = pnand %p428_p2, %p422_p13 }
  0x44   :  { %432 = shalt.err (!%p429_p3)
}
  0x45   :  { %54 = dma.hbm_to_vmem [thread:$0]  %s585_s3, 16, %s52_s17, [#allocation9]  }
  0x46   :  { %455 = dma.done.wait [#allocation3], 2048  }
  0x47   :  { %456 = vsyncadd [#allocation3], 4294965248 }
  0x48   :  { %457 = dma.done.wait [#allocation6], 144  }
  0x49   :  { %458 = vsyncadd [#allocation6], 4294967152 }
  0x4a   :  { %459 = dma.done.wait [#allocation9], 16  }
  0x4b   :  { %460 = vsyncadd [#allocation9], 4294967280  ;;  %v67_v0 = vld [vmem:[#allocation5] sm:$0x1]  ;;  %v69_v1 = vld [vmem:[#allocation5 + $0x1] sm:$0x1]  ;;  %v97_v7 = vlaneseq }
  0x4c   :  { %v68_v2 = vmul.f32 0.0078125, %v67_v0  ;;  %v70_v3 = vmul.f32 0.0078125, %v69_v1  ;;  %v73_v9 = vld [vmem:[#allocation7] sm:$0x1]  ;;  %v77_v13 = vld [vmem:[#allocation8] sm:$0x1] }
  0x4d   :  { %v98_v8 = vshrl.u32 %v97_v7, 7  ;;  %v80_v14 = vld [vmem:[#allocation2] sm:$0xff]  ;;  %v81_v15 = vld [vmem:[#allocation2 + $0x8] sm:$0xff]  ;;  %v82_v16 = vld [vmem:[#allocation2 + $0x10] sm:$0xff]  ;;  %s469_s3 = smov [#allocation10]  }
  0x4e   :  { %v71_v4 = vmul.f32 %v68_v2, %v68_v2  ;;  %v83_v17 = vld [vmem:[#allocation2 + $0x18] sm:$0xff]  ;;  %v84_v18 = vld [vmem:[#allocation2 + $0x20] sm:$0xff]  ;;  %v85_v21 = vld [vmem:[#allocation2 + $0x28] sm:$0xff]  ;;  %s241_s11 = sshll.u32 %s469_s3, 4  ;;  %s242_s11 = int_to_ptr.vmem [resolvable:$true] %s241_s11 }
  0x4f   :  { %v99_v10 = vsub.s32 0, %v98_v8  ;;  %v86_v22 = vld [vmem:[#allocation2 + $0x30] sm:$0xff]  ;;  %v87_v23 = vld [vmem:[#allocation2 + $0x38] sm:$0xff]  ;;  %v88_v24 = vld [vmem:[#allocation2 + $0x40] sm:$0xff]  ;;  %s433_s12 = scalar_lea.vmem %s242_s11, 1024  ;;  %p438_p5 = scmp.lt.s32.totalorder %s242_s11, %s242_s11 }
  0x50   :  { %v72_v5 = vsub.f32 %v70_v3, %v71_v4  ;;  %v89_v25 = vld [vmem:[#allocation2 + $0x48] sm:$0xff]  ;;  %v90_v26 = vld [vmem:[#allocation2 + $0x50] sm:$0xff]  ;;  %v91_v31 = vld [vmem:[#allocation2 + $0x58] sm:$0xff]  ;;  %p434_p4 = scmp.ne.s32.totalorder %s242_s11, %s433_s12  ;;  %p439_p6 = scmp.lt.s32.totalorder %s433_s12, %s433_s12 }
  0x51   :  { %v92_v32 = vld [vmem:[#allocation2 + $0x60] sm:$0xff]  ;;  %v93_v33 = vld [vmem:[#allocation2 + $0x68] sm:$0xff]  ;;  %v95_v3 = vld [vmem:[#allocation2 + $0x78] sm:$0xff] }
  0x52   :  { %v74_v6 = vadd.f32 1e-05, %v72_v5  ;;  %p440_p7 = por %p439_p6, %p438_p5 }
  0x54   :  { %343 = vrsqrt.f32 %v74_v6  ;;  %p441_p8 = pnand %p440_p7, %p434_p4 }
  0x5e   :  { %v344_v11 = vpop.eup %343 }
  0x5f   :  { %v76_v12 = vmul.f32 %v344_v11, %v73_v9 }
  0x61   :  { %v78_v19 = vmul.f32 %v76_v12, %v68_v2  ;;  %v552_v20 = vrot.slane %v76_v12, %v99_v10  ;;  %v94_v2 = vld [vmem:[#allocation2 + $0x70] sm:$0xff] }
  0x63   :  { %v79_v27 = vsub.f32 %v77_v13, %v78_v19  ;;  %v102_v28 = vmul.f32 %v552_v20, %v80_v14  ;;  %v103_v29 = vmul.f32 %v552_v20, %v81_v15  ;;  %v104_v30 = vmul.f32 %v552_v20, %v82_v16 }
  0x64   :  { %v105_v34 = vmul.f32 %v552_v20, %v83_v17  ;;  %v106_v35 = vmul.f32 %v552_v20, %v84_v18  ;;  %v107_v36 = vmul.f32 %v552_v20, %v85_v21  ;;  %v108_v37 = vmul.f32 %v552_v20, %v86_v22 }
  0x65   :  { %v122_v38 = vrot.slane %v79_v27, %v99_v10  ;;  %v109_v39 = vmul.f32 %v552_v20, %v87_v23  ;;  %v110_v40 = vmul.f32 %v552_v20, %v88_v24  ;;  %v111_v41 = vmul.f32 %v552_v20, %v89_v25 }
  0x66   :  { %v112_v42 = vmul.f32 %v552_v20, %v90_v26  ;;  %v113_v43 = vmul.f32 %v552_v20, %v91_v31  ;;  %v114_v44 = vmul.f32 %v552_v20, %v92_v32  ;;  %v115_v45 = vmul.f32 %v552_v20, %v93_v33 }
  0x67   :  { %v124_v46 = vadd.f32 %v122_v38, %v102_v28  ;;  %v125_v47 = vadd.f32 %v122_v38, %v103_v29  ;;  %v126_v48 = vadd.f32 %v122_v38, %v104_v30  ;;  %v127_v49 = vadd.f32 %v122_v38, %v105_v34 }
  0x68   :  { %v128_v50 = vadd.f32 %v122_v38, %v106_v35  ;;  %v129_v51 = vadd.f32 %v122_v38, %v107_v36  ;;  %v130_v52 = vadd.f32 %v122_v38, %v108_v37  ;;  %v131_v53 = vadd.f32 %v122_v38, %v109_v39 }
  0x69   :  { %v140_v54 = vmax.f32 %v124_v46, 0.0  ;;  %v141_v55 = vmax.f32 %v125_v47, 0.0  ;;  %v142_v56 = vmax.f32 %v126_v48, 0.0  ;;  %v143_v57 = vmax.f32 %v127_v49, 0.0 }
  0x6a   :  { %v144_v58 = vmax.f32 %v128_v50, 0.0  ;;  %v145_v59 = vmax.f32 %v129_v51, 0.0  ;;  %v146_v60 = vmax.f32 %v130_v52, 0.0  ;;  %v147_v61 = vmax.f32 %v131_v53, 0.0 }
  0x6b   :  { %v290_v62 = vpack.c.bf16 %v141_v55, %v140_v54  ;;  %v295_v63 = vpack.c.bf16 %v143_v57, %v142_v56  ;;  %v132_v0 = vadd.f32 %v122_v38, %v110_v40  ;;  %v133_v1 = vadd.f32 %v122_v38, %v111_v41 }
  0x6c   :  { %v300_v4 = vpack.c.bf16 %v145_v59, %v144_v58  ;;  %v305_v5 = vpack.c.bf16 %v147_v61, %v146_v60  ;;  %v134_v6 = vadd.f32 %v122_v38, %v112_v42  ;;  %v135_v7 = vadd.f32 %v122_v38, %v113_v43 }
  0x6d   :  { %291 = vst [vmem:[#allocation10] sm:$0xff] %v290_v62   ;;  %327 = vst [vmem:[#allocation10 + $0x8] sm:$0xff] %v295_v63   ;;  %v148_v8 = vmax.f32 %v132_v0, 0.0  ;;  %v149_v9 = vmax.f32 %v133_v1, 0.0  ;;  %v136_v10 = vadd.f32 %v122_v38, %v114_v44  ;;  %v137_v11 = vadd.f32 %v122_v38, %v115_v45 }
  0x6e   :  { %328 = vst [vmem:[#allocation10 + $0x10] sm:$0xff] %v300_v4   ;;  %329 = vst [vmem:[#allocation10 + $0x18] sm:$0xff] %v305_v5   ;;  %v150_v12 = vmax.f32 %v134_v6, 0.0  ;;  %v151_v13 = vmax.f32 %v135_v7, 0.0  ;;  %v116_v14 = vmul.f32 %v552_v20, %v94_v2  ;;  %v117_v15 = vmul.f32 %v552_v20, %v95_v3 }
  0x6f   :  { %v310_v16 = vpack.c.bf16 %v149_v9, %v148_v8  ;;  %v152_v17 = vmax.f32 %v136_v10, 0.0  ;;  %v153_v18 = vmax.f32 %v137_v11, 0.0 }
  0x70   :  { %v315_v19 = vpack.c.bf16 %v151_v13, %v150_v12  ;;  %v138_v21 = vadd.f32 %v122_v38, %v116_v14  ;;  %v139_v22 = vadd.f32 %v122_v38, %v117_v15 }
  0x71   :  { %330 = vst [vmem:[#allocation10 + $0x20] sm:$0xff] %v310_v16   ;;  %v320_v23 = vpack.c.bf16 %v153_v18, %v152_v17 }
  0x72   :  { %331 = vst [vmem:[#allocation10 + $0x28] sm:$0xff] %v315_v19   ;;  %v154_v24 = vmax.f32 %v138_v21, 0.0  ;;  %v155_v25 = vmax.f32 %v139_v22, 0.0 }
  0x73   :  { %332 = vst [vmem:[#allocation10 + $0x30] sm:$0xff] %v320_v23  }
  0x74   :  { %v325_v26 = vpack.c.bf16 %v155_v25, %v154_v24 }
  0x76   :  { %333 = vst [vmem:[#allocation10 + $0x38] sm:$0xff] %v325_v26  }
  0x77   :  { %444 = shalt.err (!%p441_p8)
}
  0x78   :  { %s445_s15 = scalar_lea.hbm %s586_s4, 1024 }
  0x79   :  { %p446_p9 = scmp.ne.s32.totalorder %s586_s4, %s445_s15  ;;  %p449_p10 = scmp.lt.u32.totalorder %s445_s15, %s586_s4 }
  0x7b   :  { %p451_p11 = pnand %p449_p10, %p446_p9 }
  0x7d   :  { %454 = shalt.err (!%p451_p11)
}
  0x7e   :  { %s470_s21 = smov 64   ;;  %s471_s22 = smov 4  }
  0x7f   :  { %247 = dma.vmem_to_hbm [thread:$0]  %s242_s11, 1024, %s586_s4, [#allocation4], %s470_s21, %s470_s21, %s471_s22  }
  0x80   :  { %461 = dma.done.wait [#allocation4], 1024  }
  0x81   :  { %462 = vsyncadd [#allocation4], 4294966272 }
  0x82   :  { %251 = vsyncpa [#allocation3], 1 }
  0x83   :  { %252 = vsyncpa [#allocation6], 1 }
  0x84   :  { %253 = vsyncpa [#allocation9], 1 }
  0x85   :  { %254 = vsyncpa [#allocation4], 1 }

// kernel: resblock_forward.4
= control target key start
LH: loop header
LB: loop body
LE: loop exit
PB: predicated region body
PF: predicated region fallthrough
CT: control target
= control target key end

     0   :  { %9 = vsyncpa [#allocation3], 0  ;;  %s749_s0 = inlined_call_operand.hbm [shape: bf16[128,128], index: 0, kind: input, shape index: {}]   ;;  %s750_s1 = inlined_call_operand.hbm [shape: bf16[128,128], index: 1, kind: input, shape index: {}]   ;;  %s751_s2 = inlined_call_operand.hbm [shape: f32[128,128], index: 2, kind: output, shape index: {0}]   ;;  %s752_s3 = inlined_call_operand.hbm [shape: f32[8,128], index: 3, kind: output, shape index: {1}]  }
   0x1   :  { %10 = vsyncpa [#allocation6], 0 }
   0x2   :  { %11 = vsyncpa [#allocation4], 0 }
   0x3   :  { %12 = vsyncpa [#allocation9], 0  ;;  %s654_s12 = smov [#allocation2]   ;;  %s558_s16 = scalar_lea.hbm %s749_s0, 1024 }
   0x4   :  { %s18_s13 = sshll.u32 %s654_s12, 4  ;;  %p559_p0 = scmp.ne.s32.totalorder %s749_s0, %s558_s16  ;;  %s19_s13 = int_to_ptr.vmem [resolvable:$true] %s18_s13 }
   0x5   :  { %p562_p1 = scmp.lt.u32.totalorder %s558_s16, %s749_s0 }
   0x7   :  { %p564_p2 = pnand %p562_p1, %p559_p0 }
   0x9   :  { %567 = shalt.err (!%p564_p2)
}
   0xa   :  { %s568_s21 = scalar_lea.vmem %s19_s13, 1024  ;;  %p573_p4 = scmp.lt.s32.totalorder %s19_s13, %s19_s13 }
   0xb   :  { %p569_p3 = scmp.ne.s32.totalorder %s19_s13, %s568_s21  ;;  %p574_p5 = scmp.lt.s32.totalorder %s568_s21, %s568_s21 }
   0xd   :  { %p575_p6 = por %p574_p5, %p573_p4 }
   0xf   :  { %p576_p7 = pnand %p575_p6, %p569_p3 }
  0x11   :  { %579 = shalt.err (!%p576_p7)
}
  0x12   :  { %s655_s22 = smov 64   ;;  %s656_s23 = smov 4  }
  0x13   :  { %24 = dma.hbm_to_vmem [thread:$0]  %s749_s0, 1024, %s19_s13, [#allocation3], %s655_s22, %s655_s22, %s656_s23  }
  0x14   :  { %s657_s26 = smov [#allocation5]   ;;  %s580_s30 = scalar_lea.hbm %s750_s1, 1024 }
  0x15   :  { %s30_s27 = sshll.u32 %s657_s26, 4  ;;  %p581_p8 = scmp.ne.s32.totalorder %s750_s1, %s580_s30  ;;  %s31_s27 = int_to_ptr.vmem [resolvable:$true] %s30_s27 }
  0x16   :  { %p584_p9 = scmp.lt.u32.totalorder %s580_s30, %s750_s1 }
  0x18   :  { %p586_p10 = pnand %p584_p9, %p581_p8 }
  0x1a   :  { %589 = shalt.err (!%p586_p10)
}
  0x1b   :  { %s590_s8 = scalar_lea.vmem %s31_s27, 1024  ;;  %p595_p12 = scmp.lt.s32.totalorder %s31_s27, %s31_s27 }
  0x1c   :  { %p591_p11 = scmp.ne.s32.totalorder %s31_s27, %s590_s8  ;;  %p596_p13 = scmp.lt.s32.totalorder %s590_s8, %s590_s8 }
  0x1e   :  { %p597_p0 = por %p596_p13, %p595_p12 }
  0x20   :  { %p598_p1 = pnand %p597_p0, %p591_p11 }
  0x22   :  { %601 = shalt.err (!%p598_p1)
}
  0x23   :  { %36 = dma.hbm_to_vmem [thread:$0]  %s750_s1, 1024, %s31_s27, [#allocation6], %s655_s22, %s655_s22, %s656_s23  }
  0x24   :  { %646 = dma.done.wait [#allocation3], 1024  }
  0x25   :  { %647 = vsyncadd [#allocation3], 4294966272 }
  0x26   :  { %648 = dma.done.wait [#allocation6], 1024  }
  0x27   :  { %649 = vsyncadd [#allocation6], 4294966272  ;;  %v542_v0 = vld [vmem:[#allocation5] sm:$0xff]   ;;  %v543_v1 = vld [vmem:[#allocation5 + $0x8] sm:$0xff]   ;;  %v658_v16 = vmov 0.0   ;;  %s659_s1 = smov [#allocation7]  }
  0x28   :  { %485 = vmatprep.subr.bf16.mxu0 %v542_v0  ;;  %517 = vmatprep.subr.bf16.mxu1 %v542_v0  ;;  %v544_v2 = vld [vmem:[#allocation5 + $0x10] sm:$0xff]   ;;  %v545_v3 = vld [vmem:[#allocation5 + $0x18] sm:$0xff]   ;;  %v550_v4 = vld [vmem:[#allocation2] sm:$0xff]   ;;  %289 = vst [vmem:[#allocation8] sm:$0xff] %v658_v16  ;;  %s426_s10 = sshll.u32 %s659_s1, 4  ;;  %s427_s10 = int_to_ptr.vmem [resolvable:$true] %s426_s10 }
  0x29   :  { %486 = vmatpush3.bf16.msra.mxu0 %v542_v0  ;;  %525 = vmatpush3.bf16.msra.mxu1 %v542_v0  ;;  %v546_v5 = vld [vmem:[#allocation5 + $0x20] sm:$0xff]   ;;  %v547_v7 = vld [vmem:[#allocation5 + $0x28] sm:$0xff]   ;;  %v548_v8 = vld [vmem:[#allocation5 + $0x30] sm:$0xff]   ;;  %s602_s11 = scalar_lea.vmem %s427_s10, 2048  ;;  %p607_p3 = scmp.lt.s32.totalorder %s427_s10, %s427_s10 }
  0x2a   :  { %487 = vmatprep.subr.bf16.mxu0 %v543_v1  ;;  %518 = vmatprep.subr.bf16.mxu1 %v543_v1  ;;  %v554_v6 = vld [vmem:[#allocation2 + $0x20] sm:$0xff]   ;;  %v549_v9 = vld [vmem:[#allocation5 + $0x38] sm:$0xff]   ;;  %v551_v10 = vld [vmem:[#allocation2 + $0x8] sm:$0xff]   ;;  %p603_p2 = scmp.ne.s32.totalorder %s427_s10, %s602_s11  ;;  %p608_p4 = scmp.lt.s32.totalorder %s602_s11, %s602_s11 }
  0x2b   :  { %501 = vmatprep.mubr.bf16.mxu0 %v550_v4  ;;  %509 = vmatprep.mubr.bf16.mxu1 %v554_v6  ;;  %v555_v11 = vld [vmem:[#allocation2 + $0x28] sm:$0xff]   ;;  %v552_v12 = vld [vmem:[#allocation2 + $0x10] sm:$0xff]   ;;  %v553_v14 = vld [vmem:[#allocation2 + $0x18] sm:$0xff]  }
  0x2c   :  { %v556_v13 = vld [vmem:[#allocation2 + $0x30] sm:$0xff]   ;;  %v557_v15 = vld [vmem:[#allocation2 + $0x38] sm:$0xff]   ;;  %p609_p5 = por %p608_p4, %p607_p3 }
  0x2d   :  { %488 = vmatpush3.bf16.msra.mxu0 %v543_v1  ;;  %526 = vmatpush3.bf16.msra.mxu1 %v543_v1 }
  0x2e   :  { %489 = vmatprep.subr.bf16.mxu0 %v544_v2  ;;  %519 = vmatprep.subr.bf16.mxu1 %v544_v2  ;;  %p610_p6 = pnand %p609_p5, %p603_p2 }
  0x31   :  { %490 = vmatpush3.bf16.msra.mxu0 %v544_v2  ;;  %527 = vmatpush3.bf16.msra.mxu1 %v544_v2 }
  0x32   :  { %491 = vmatprep.subr.bf16.mxu0 %v545_v3  ;;  %520 = vmatprep.subr.bf16.mxu1 %v545_v3 }
  0x35   :  { %492 = vmatpush3.bf16.msra.mxu0 %v545_v3  ;;  %528 = vmatpush3.bf16.msra.mxu1 %v545_v3 }
  0x36   :  { %493 = vmatprep.subr.bf16.mxu0 %v546_v5  ;;  %521 = vmatprep.subr.bf16.mxu1 %v546_v5 }
  0x39   :  { %494 = vmatpush3.bf16.msra.mxu0 %v546_v5  ;;  %529 = vmatpush3.bf16.msra.mxu1 %v546_v5 }
  0x3a   :  { %495 = vmatprep.subr.bf16.mxu0 %v547_v7  ;;  %522 = vmatprep.subr.bf16.mxu1 %v547_v7 }
  0x3d   :  { %496 = vmatpush3.bf16.msra.mxu0 %v547_v7  ;;  %530 = vmatpush3.bf16.msra.mxu1 %v547_v7 }
  0x3e   :  { %497 = vmatprep.subr.bf16.mxu0 %v548_v8  ;;  %523 = vmatprep.subr.bf16.mxu1 %v548_v8 }
  0x41   :  { %498 = vmatpush3.bf16.msra.mxu0 %v548_v8  ;;  %531 = vmatpush3.bf16.msra.mxu1 %v548_v8 }
  0x42   :  { %499 = vmatprep.subr.bf16.mxu0 %v549_v9  ;;  %524 = vmatprep.subr.bf16.mxu1 %v549_v9 }
  0x45   :  { %500 = vmatpush3.bf16.msra.mxu0 %v549_v9  ;;  %532 = vmatpush3.bf16.msra.mxu1 %v549_v9 }
  0x48   :  { %502 = vmatmul.mubr.bf16.vlgmr.msra.gmra.mrb[0].mxu0 %v551_v10  ;;  %510 = vmatmul.mubr.bf16.vlgmr.msra.gmra.mrb[0].mxu1 %v555_v11 }
  0x49   :  { %505 = vmatprep.mubr.bf16.mxu0 %v552_v12  ;;  %513 = vmatprep.mubr.bf16.mxu1 %v556_v13 }
  0x50   :  { %506 = vmatmul.mubr.bf16.gmra.mrb[4].mxu0 %v553_v14  ;;  %514 = vmatmul.mubr.bf16.gmra.mrb[4].mxu1 %v557_v15 }
 0x11b   :  { %v503_v17 = vpop.f32.mrb[0].mxu0  ;;  %v707_v18 = vpop.f32.mrb[0].mxu1 }
 0x11c   :  { %271 = vst [vmem:[#allocation7 + $0x10] sm:$0xff] %v503_v17  ;;  %v206_v19 = vpop.f32.mrb[1].mxu0  ;;  %279 = vst [vmem:[#allocation7 + $0x50] sm:$0xff] %v707_v18  ;;  %v710_v20 = vpop.f32.mrb[1].mxu1  ;;  %v384_v28 = vmul.f32 %v503_v17, %v503_v17 }
 0x11d   :  { %269 = vst [vmem:[#allocation7] sm:$0xff] %v206_v19  ;;  %v504_v21 = vpop.f32.mrb[2].mxu0  ;;  %277 = vst [vmem:[#allocation7 + $0x40] sm:$0xff] %v710_v20  ;;  %v713_v22 = vpop.f32.mrb[2].mxu1  ;;  %v382_v25 = vmul.f32 %v206_v19, %v206_v19 }
 0x11e   :  { %272 = vst [vmem:[#allocation7 + $0x18] sm:$0xff] %v504_v21  ;;  %v209_v23 = vpop.f32.mrb[3].mxu0  ;;  %280 = vst [vmem:[#allocation7 + $0x58] sm:$0xff] %v713_v22  ;;  %v241_v24 = vpop.f32.mrb[3].mxu1  ;;  %v385_v31 = vmul.f32 %v504_v21, %v504_v21 }
 0x11f   :  { %270 = vst [vmem:[#allocation7 + $0x8] sm:$0xff] %v209_v23  ;;  %v358_v26 = vadd.f32 %v209_v23, %v206_v19  ;;  %v383_v27 = vmul.f32 %v209_v23, %v209_v23  ;;  %278 = vst [vmem:[#allocation7 + $0x48] sm:$0xff] %v241_v24 }
 0x121   :  { %v359_v29 = vadd.f32 %v503_v17, %v358_v26  ;;  %v398_v30 = vadd.f32 %v383_v27, %v382_v25 }
 0x123   :  { %v399_v32 = vadd.f32 %v398_v30, %v384_v28  ;;  %v507_v33 = vpop.f32.mrb[4].mxu0  ;;  %v360_v34 = vadd.f32 %v504_v21, %v359_v29  ;;  %v515_v35 = vpop.f32.mrb[4].mxu1 }
 0x124   :  { %275 = vst [vmem:[#allocation7 + $0x30] sm:$0xff] %v507_v33  ;;  %v222_v36 = vpop.f32.mrb[5].mxu0  ;;  %283 = vst [vmem:[#allocation7 + $0x70] sm:$0xff] %v515_v35  ;;  %v254_v37 = vpop.f32.mrb[5].mxu1 }
 0x125   :  { %273 = vst [vmem:[#allocation7 + $0x20] sm:$0xff] %v222_v36  ;;  %v361_v38 = vadd.f32 %v360_v34, %v222_v36  ;;  %v386_v39 = vmul.f32 %v222_v36, %v222_v36  ;;  %v400_v40 = vadd.f32 %v399_v32, %v385_v31  ;;  %v508_v41 = vpop.f32.mrb[6].mxu0  ;;  %281 = vst [vmem:[#allocation7 + $0x60] sm:$0xff] %v254_v37  ;;  %v516_v42 = vpop.f32.mrb[6].mxu1 }
 0x126   :  { %276 = vst [vmem:[#allocation7 + $0x38] sm:$0xff] %v508_v41  ;;  %v225_v43 = vpop.f32.mrb[7].mxu0  ;;  %284 = vst [vmem:[#allocation7 + $0x78] sm:$0xff] %v516_v42  ;;  %v257_v44 = vpop.f32.mrb[7].mxu1 }
 0x127   :  { %v401_v45 = vadd.f32 %v400_v40, %v386_v39  ;;  %274 = vst [vmem:[#allocation7 + $0x28] sm:$0xff] %v225_v43  ;;  %v362_v46 = vadd.f32 %v361_v38, %v225_v43  ;;  %v387_v47 = vmul.f32 %v225_v43, %v225_v43  ;;  %282 = vst [vmem:[#allocation7 + $0x68] sm:$0xff] %v257_v44 }
 0x128   :  { %613 = shalt.err (!%p610_p6)
}
 0x129   :  { %s614_s14 = scalar_lea.hbm %s751_s2, 2048 }
 0x12a   :  { %p615_p7 = scmp.ne.s32.totalorder %s751_s2, %s614_s14  ;;  %p618_p8 = scmp.lt.u32.totalorder %s614_s14, %s751_s2 }
 0x12c   :  { %p620_p9 = pnand %p618_p8, %p615_p7 }
 0x12e   :  { %623 = shalt.err (!%p620_p9)
}
 0x12f   :  { %s660_s19 = smov 128   ;;  %s661_s20 = smov 8   ;;  %v388_v48 = vmul.f32 %v507_v33, %v507_v33  ;;  %v363_v49 = vadd.f32 %v507_v33, %v362_v46  ;;  %v402_v50 = vadd.f32 %v401_v45, %v387_v47  ;;  %v389_v51 = vmul.f32 %v508_v41, %v508_v41  ;;  %v381_v27 = vld [vmem:[#allocation8 + $0x1] sm:$0x1] }
 0x130   :  { %432 = dma.vmem_to_hbm [thread:$0]  %s427_s10, 2048, %s751_s2, [#allocation4], %s660_s19, %s660_s19, %s661_s20   ;;  %v390_v54 = vmul.f32 %v710_v20, %v710_v20  ;;  %v391_v59 = vmul.f32 %v241_v24, %v241_v24  ;;  %v392_v60 = vmul.f32 %v707_v18, %v707_v18  ;;  %v393_v63 = vmul.f32 %v713_v22, %v713_v22 }
 0x131   :  { %v403_v52 = vadd.f32 %v402_v50, %v388_v48  ;;  %v364_v53 = vadd.f32 %v508_v41, %v363_v49  ;;  %v394_v2 = vmul.f32 %v254_v37, %v254_v37  ;;  %v395_v7 = vmul.f32 %v257_v44, %v257_v44  ;;  %s662_s2 = smov [#allocation8]  }
 0x132   :  { %v396_v8 = vmul.f32 %v515_v35, %v515_v35  ;;  %v397_v11 = vmul.f32 %v516_v42, %v516_v42  ;;  %s439_s23 = sshll.u32 %s662_s2, 4  ;;  %s440_s23 = int_to_ptr.vmem [resolvable:$true] %s439_s23 }
 0x133   :  { %v365_v55 = vadd.f32 %v364_v53, %v710_v20  ;;  %v404_v56 = vadd.f32 %v403_v52, %v389_v51  ;;  %s624_s24 = scalar_lea.vmem %s440_s23, 128  ;;  %p629_p11 = scmp.lt.s32.totalorder %s440_s23, %s440_s23 }
 0x134   :  { %p625_p10 = scmp.ne.s32.totalorder %s440_s23, %s624_s24  ;;  %p630_p12 = scmp.lt.s32.totalorder %s624_s24, %s624_s24 }
 0x135   :  { %v405_v57 = vadd.f32 %v404_v56, %v390_v54  ;;  %v366_v58 = vadd.f32 %v365_v55, %v241_v24  ;;  %v357_v24 = vld [vmem:[#allocation8] sm:$0x1] }
 0x136   :  { %p631_p13 = por %p630_p12, %p629_p11 }
 0x137   :  { %v367_v61 = vadd.f32 %v707_v18, %v366_v58  ;;  %v406_v62 = vadd.f32 %v405_v57, %v391_v59 }
 0x138   :  { %p632_p0 = pnand %p631_p13, %p625_p10 }
 0x139   :  { %v407_v0 = vadd.f32 %v406_v62, %v392_v60  ;;  %v368_v1 = vadd.f32 %v713_v22, %v367_v61 }
 0x13b   :  { %v369_v3 = vadd.f32 %v368_v1, %v254_v37  ;;  %v408_v4 = vadd.f32 %v407_v0, %v393_v63 }
 0x13d   :  { %v409_v5 = vadd.f32 %v408_v4, %v394_v2  ;;  %v370_v6 = vadd.f32 %v369_v3, %v257_v44 }
 0x13f   :  { %v371_v9 = vadd.f32 %v515_v35, %v370_v6  ;;  %v410_v10 = vadd.f32 %v409_v5, %v395_v7 }
 0x141   :  { %v372_v12 = vadd.f32 %v516_v42, %v371_v9  ;;  %v411_v13 = vadd.f32 %v410_v10, %v396_v8 }
 0x143   :  { %v373_v14 = vrot.slane %v372_v12, 4  ;;  %v412_v15 = vadd.f32 %v411_v13, %v397_v11 }
 0x145   :  { %v374_v16 = vadd.f32 %v373_v14, %v372_v12  ;;  %v413_v17 = vrot.slane %v412_v15, 4 }
 0x147   :  { %v375_v18 = vrot.slane %v374_v16, 2  ;;  %v414_v19 = vadd.f32 %v413_v17, %v412_v15 }
 0x149   :  { %v376_v20 = vadd.f32 %v375_v18, %v374_v16  ;;  %v415_v21 = vrot.slane %v414_v19, 2 }
 0x14b   :  { %v377_v22 = vrot.slane %v376_v20, 1  ;;  %v416_v23 = vadd.f32 %v415_v21, %v414_v19 }
 0x14d   :  { %v378_v25 = vadd.f32 %v377_v22, %v376_v20  ;;  %v417_v26 = vrot.slane %v416_v23, 1 }
 0x14f   :  { %v379_v28 = vadd.f32 %v378_v25, %v357_v24  ;;  %v418_v29 = vadd.f32 %v417_v26, %v416_v23 }
 0x151   :  { %380 = vst [vmem:[#allocation8] sm:$0x1] %v379_v28  ;;  %v419_v30 = vadd.f32 %v418_v29, %v381_v27 }
 0x153   :  { %420 = vst [vmem:[#allocation8 + $0x1] sm:$0x1] %v419_v30 }
 0x154   :  { %635 = shalt.err (!%p632_p0)
}
 0x155   :  { %s636_s27 = scalar_lea.hbm %s752_s3, 128 }
 0x156   :  { %p637_p1 = scmp.ne.s32.totalorder %s752_s3, %s636_s27  ;;  %p640_p2 = scmp.lt.u32.totalorder %s636_s27, %s752_s3 }
 0x158   :  { %p642_p3 = pnand %p640_p2, %p637_p1 }
 0x15a   :  { %645 = shalt.err (!%p642_p3)
}
 0x15b   :  { %442 = dma.vmem_to_hbm [thread:$0]  %s440_s23, 128, %s752_s3, [#allocation9]  }
 0x15c   :  { %650 = dma.done.wait [#allocation4], 2048  }
 0x15d   :  { %651 = vsyncadd [#allocation4], 4294965248 }
 0x15e   :  { %652 = dma.done.wait [#allocation9], 128  }
 0x15f   :  { %653 = vsyncadd [#allocation9], 4294967168 }
 0x160   :  { %449 = vsyncpa [#allocation3], 1 }
 0x161   :  { %450 = vsyncpa [#allocation6], 1 }
 0x162   :  { %451 = vsyncpa [#allocation4], 1 }
 0x163   :  { %452 = vsyncpa [#allocation9], 1 }

// kernel: resblock_forward.7
= control target key start
LH: loop header
LB: loop body
LE: loop exit
PB: predicated region body
PF: predicated region fallthrough
CT: control target
= control target key end

     0   :  { %13 = vsyncpa [#allocation3], 0  ;;  %s819_s0 = inlined_call_operand.hbm [shape: f32[128,128], index: 0, kind: input, shape index: {}]   ;;  %s820_s1 = inlined_call_operand.hbm [shape: f32[128,128], index: 1, kind: input, shape index: {}]   ;;  %s821_s2 = inlined_call_operand.hbm [shape: f32[8,128], index: 2, kind: input, shape index: {}]   ;;  %s822_s3 = inlined_call_operand.hbm [shape: f32[8,128], index: 3, kind: input, shape index: {}]   ;;  %s823_s4 = inlined_call_operand.hbm [shape: f32[1,128], index: 4, kind: input, shape index: {}]   ;;  %s824_s5 = inlined_call_operand.hbm [shape: f32[1,128], index: 5, kind: input, shape index: {}]   ;;  %s825_s6 = inlined_call_operand.hbm [shape: f32[1,128], index: 6, kind: input, shape index: {}]   ;;  %s826_s7 = inlined_call_operand.hbm [shape: f32[1,128], index: 7, kind: input, shape index: {}]   ;;  %s827_s8 = inlined_call_operand.hbm [shape: f32[128,128], index: 8, kind: output, shape index: {}]  }
   0x1   :  { %14 = vsyncpa [#allocation6], 0 }
   0x2   :  { %15 = vsyncpa [#allocation9], 0 }
   0x3   :  { %16 = vsyncpa [#allocation12], 0 }
   0x4   :  { %17 = vsyncpa [#allocation15], 0 }
   0x5   :  { %18 = vsyncpa [#allocation4], 0  ;;  %s567_s27 = smov [#allocation5]   ;;  %s568_s29 = smov [#allocation8]  }
   0x6   :  { %s36_s28 = sshll.u32 %s567_s27, 4  ;;  %s59_s30 = sshll.u32 %s568_s29, 4  ;;  %s37_s28 = int_to_ptr.vmem [resolvable:$true] %s36_s28  ;;  %s60_s30 = int_to_ptr.vmem [resolvable:$true] %s59_s30 }
   0x7   :  { %s357_s11 = scalar_lea.hbm %s820_s1, 2048 }
   0x8   :  { %p358_p0 = scmp.ne.s32.totalorder %s820_s1, %s357_s11  ;;  %p361_p1 = scmp.lt.u32.totalorder %s357_s11, %s820_s1 }
   0xa   :  { %p363_p2 = pnand %p361_p1, %p358_p0 }
   0xc   :  { %366 = shalt.err (!%p363_p2)
}
   0xd   :  { %s367_s16 = scalar_lea.vmem %s37_s28, 2048  ;;  %p372_p4 = scmp.lt.s32.totalorder %s37_s28, %s37_s28 }
   0xe   :  { %p368_p3 = scmp.ne.s32.totalorder %s37_s28, %s367_s16  ;;  %p373_p5 = scmp.lt.s32.totalorder %s367_s16, %s367_s16 }
  0x10   :  { %p374_p6 = por %p373_p5, %p372_p4 }
  0x12   :  { %p375_p7 = pnand %p374_p6, %p368_p3 }
  0x14   :  { %378 = shalt.err (!%p375_p7)
}
  0x15   :  { %s569_s17 = smov 128   ;;  %s570_s18 = smov 8  }
  0x16   :  { %42 = dma.hbm_to_vmem [thread:$0]  %s820_s1, 2048, %s37_s28, [#allocation6], %s569_s17, %s569_s17, %s570_s18  }
  0x17   :  { %s379_s23 = scalar_lea.hbm %s822_s3, 128 }
  0x18   :  { %p380_p8 = scmp.ne.s32.totalorder %s822_s3, %s379_s23  ;;  %p383_p9 = scmp.lt.u32.totalorder %s379_s23, %s822_s3 }
  0x1a   :  { %p385_p10 = pnand %p383_p9, %p380_p8 }
  0x1c   :  { %388 = shalt.err (!%p385_p10)
}
  0x1d   :  { %s389_s29 = scalar_lea.vmem %s60_s30, 128  ;;  %p394_p12 = scmp.lt.s32.totalorder %s60_s30, %s60_s30 }
  0x1e   :  { %p390_p11 = scmp.ne.s32.totalorder %s60_s30, %s389_s29  ;;  %p395_p13 = scmp.lt.s32.totalorder %s389_s29, %s389_s29 }
  0x20   :  { %p396_p0 = por %p395_p13, %p394_p12 }
  0x22   :  { %p397_p1 = pnand %p396_p0, %p390_p11 }
  0x24   :  { %400 = shalt.err (!%p397_p1)
}
  0x25   :  { %62 = dma.hbm_to_vmem [thread:$0]  %s822_s3, 128, %s60_s30, [#allocation9]  }
  0x26   :  { %s571_s9 = smov [#allocation11]   ;;  %s572_s11 = smov [#allocation2]  }
  0x27   :  { %s79_s10 = sshll.u32 %s571_s9, 4  ;;  %s24_s12 = sshll.u32 %s572_s11, 4  ;;  %s80_s10 = int_to_ptr.vmem [resolvable:$true] %s79_s10  ;;  %s650_s12 = int_to_ptr.vmem [resolvable:$true] %s24_s12 }
  0x28   :  { %s401_s15 = scalar_lea.hbm %s824_s5, 16 }
  0x29   :  { %p402_p2 = scmp.ne.s32.totalorder %s824_s5, %s401_s15  ;;  %p405_p3 = scmp.lt.u32.totalorder %s401_s15, %s824_s5 }
  0x2b   :  { %p407_p4 = pnand %p405_p3, %p402_p2 }
  0x2d   :  { %410 = shalt.err (!%p407_p4)
}
  0x2e   :  { %s411_s3 = scalar_lea.vmem %s80_s10, 16  ;;  %s415_s30 = scalar_lea.vmem %s80_s10, 32 }
  0x2f   :  { %p412_p5 = scmp.ne.s32.totalorder %s80_s10, %s411_s3  ;;  %p416_p6 = scmp.lt.s32.totalorder %s80_s10, %s80_s10 }
  0x30   :  { %p417_p7 = scmp.lt.s32.totalorder %s415_s30, %s411_s3 }
  0x32   :  { %p418_p8 = por %p417_p7, %p416_p6 }
  0x34   :  { %p419_p9 = pnand %p418_p8, %p412_p5 }
  0x36   :  { %422 = shalt.err (!%p419_p9)
}
  0x37   :  { %82 = dma.hbm_to_vmem [thread:$0]  %s824_s5, 16, %s80_s10, [#allocation12]  }
  0x38   :  { %s423_s26 = scalar_lea.hbm %s819_s0, 2048 }
  0x39   :  { %p424_p10 = scmp.ne.s32.totalorder %s819_s0, %s423_s26  ;;  %p427_p11 = scmp.lt.u32.totalorder %s423_s26, %s819_s0 }
  0x3b   :  { %p429_p12 = pnand %p427_p11, %p424_p10 }
  0x3d   :  { %432 = shalt.err (!%p429_p12)
}
  0x3e   :  { %s433_s9 = scalar_lea.vmem %s650_s12, 2048  ;;  %p438_p0 = scmp.lt.s32.totalorder %s650_s12, %s650_s12 }
  0x3f   :  { %p434_p13 = scmp.ne.s32.totalorder %s650_s12, %s433_s9  ;;  %p439_p1 = scmp.lt.s32.totalorder %s433_s9, %s433_s9 }
  0x41   :  { %p440_p2 = por %p439_p1, %p438_p0 }
  0x43   :  { %p441_p3 = pnand %p440_p2, %p434_p13 }
  0x45   :  { %444 = shalt.err (!%p441_p3)
}
  0x46   :  { %30 = dma.hbm_to_vmem [thread:$0]  %s819_s0, 2048, %s650_s12, [#allocation3], %s569_s17, %s569_s17, %s570_s18  }
  0x47   :  { %s573_s11 = smov [#allocation7]   ;;  %s574_s14 = smov [#allocation10]  }
  0x48   :  { %s49_s13 = sshll.u32 %s573_s11, 4  ;;  %s69_s15 = sshll.u32 %s574_s14, 4  ;;  %s50_s13 = int_to_ptr.vmem [resolvable:$true] %s49_s13  ;;  %s70_s15 = int_to_ptr.vmem [resolvable:$true] %s69_s15 }
  0x49   :  { %s445_s20 = scalar_lea.hbm %s821_s2, 128 }
  0x4a   :  { %p446_p4 = scmp.ne.s32.totalorder %s821_s2, %s445_s20  ;;  %p449_p5 = scmp.lt.u32.totalorder %s445_s20, %s821_s2 }
  0x4c   :  { %p451_p6 = pnand %p449_p5, %p446_p4 }
  0x4e   :  { %454 = shalt.err (!%p451_p6)
}
  0x4f   :  { %s455_s0 = scalar_lea.vmem %s50_s13, 128  ;;  %p460_p8 = scmp.lt.s32.totalorder %s50_s13, %s50_s13 }
  0x50   :  { %p456_p7 = scmp.ne.s32.totalorder %s50_s13, %s455_s0  ;;  %p461_p9 = scmp.lt.s32.totalorder %s455_s0, %s455_s0 }
  0x52   :  { %p462_p10 = por %p461_p9, %p460_p8 }
  0x54   :  { %p463_p11 = pnand %p462_p10, %p456_p7 }
  0x56   :  { %466 = shalt.err (!%p463_p11)
}
  0x57   :  { %52 = dma.hbm_to_vmem [thread:$0]  %s821_s2, 128, %s50_s13, [#allocation6]  }
  0x58   :  { %s467_s26 = scalar_lea.hbm %s823_s4, 16 }
  0x59   :  { %p468_p12 = scmp.ne.s32.totalorder %s823_s4, %s467_s26  ;;  %p471_p13 = scmp.lt.u32.totalorder %s467_s26, %s823_s4 }
  0x5b   :  { %p473_p0 = pnand %p471_p13, %p468_p12 }
  0x5d   :  { %476 = shalt.err (!%p473_p0)
}
  0x5e   :  { %s477_s9 = scalar_lea.vmem %s70_s15, 16  ;;  %s481_s5 = scalar_lea.vmem %s70_s15, 32 }
  0x5f   :  { %p478_p1 = scmp.ne.s32.totalorder %s70_s15, %s477_s9  ;;  %p482_p2 = scmp.lt.s32.totalorder %s70_s15, %s70_s15 }
  0x60   :  { %p483_p3 = scmp.lt.s32.totalorder %s481_s5, %s477_s9 }
  0x62   :  { %p484_p4 = por %p483_p3, %p482_p2 }
  0x64   :  { %p485_p5 = pnand %p484_p4, %p478_p1 }
  0x66   :  { %488 = shalt.err (!%p485_p5)
}
  0x67   :  { %72 = dma.hbm_to_vmem [thread:$0]  %s823_s4, 16, %s70_s15, [#allocation9]  }
  0x68   :  { %s575_s11 = smov [#allocation13]   ;;  %s576_s14 = smov [#allocation14]  }
  0x69   :  { %s89_s13 = sshll.u32 %s575_s11, 4  ;;  %s99_s16 = sshll.u32 %s576_s14, 4  ;;  %s90_s13 = int_to_ptr.vmem [resolvable:$true] %s89_s13  ;;  %s100_s16 = int_to_ptr.vmem [resolvable:$true] %s99_s16 }
  0x6a   :  { %s489_s21 = scalar_lea.hbm %s825_s6, 16 }
  0x6b   :  { %p490_p6 = scmp.ne.s32.totalorder %s825_s6, %s489_s21  ;;  %p493_p7 = scmp.lt.u32.totalorder %s489_s21, %s825_s6 }
  0x6d   :  { %p495_p8 = pnand %p493_p7, %p490_p6 }
  0x6f   :  { %498 = shalt.err (!%p495_p8)
}
  0x70   :  { %s499_s4 = scalar_lea.vmem %s90_s13, 16  ;;  %s503_s15 = scalar_lea.vmem %s90_s13, 32 }
  0x71   :  { %p500_p9 = scmp.ne.s32.totalorder %s90_s13, %s499_s4  ;;  %p504_p10 = scmp.lt.s32.totalorder %s90_s13, %s90_s13 }
  0x72   :  { %p505_p11 = scmp.lt.s32.totalorder %s503_s15, %s499_s4 }
  0x74   :  { %p506_p12 = por %p505_p11, %p504_p10 }
  0x76   :  { %p507_p13 = pnand %p506_p12, %p500_p9 }
  0x78   :  { %510 = shalt.err (!%p507_p13)
}
  0x79   :  { %92 = dma.hbm_to_vmem [thread:$0]  %s825_s6, 16, %s90_s13, [#allocation12]  }
  0x7a   :  { %s511_s26 = scalar_lea.hbm %s826_s7, 16 }
  0x7b   :  { %p512_p0 = scmp.ne.s32.totalorder %s826_s7, %s511_s26  ;;  %p515_p1 = scmp.lt.u32.totalorder %s511_s26, %s826_s7 }
  0x7d   :  { %p517_p2 = pnand %p515_p1, %p512_p0 }
  0x7f   :  { %520 = shalt.err (!%p517_p2)
}
  0x80   :  { %s521_s9 = scalar_lea.vmem %s100_s16, 16  ;;  %s525_s5 = scalar_lea.vmem %s100_s16, 32 }
  0x81   :  { %p522_p3 = scmp.ne.s32.totalorder %s100_s16, %s521_s9  ;;  %p526_p4 = scmp.lt.s32.totalorder %s100_s16, %s100_s16 }
  0x82   :  { %p527_p5 = scmp.lt.s32.totalorder %s525_s5, %s521_s9 }
  0x84   :  { %p528_p6 = por %p527_p5, %p526_p4 }
  0x86   :  { %p529_p7 = pnand %p528_p6, %p522_p3 }
  0x88   :  { %532 = shalt.err (!%p529_p7)
}
  0x89   :  { %102 = dma.hbm_to_vmem [thread:$0]  %s826_s7, 16, %s100_s16, [#allocation15]  }
  0x8a   :  { %555 = dma.done.wait [#allocation3], 2048  }
  0x8b   :  { %556 = vsyncadd [#allocation3], 4294965248 }
  0x8c   :  { %557 = dma.done.wait [#allocation6], 2176  }
  0x8d   :  { %558 = vsyncadd [#allocation6], 4294965120 }
  0x8e   :  { %559 = dma.done.wait [#allocation9], 144  }
  0x8f   :  { %560 = vsyncadd [#allocation9], 4294967152 }
  0x90   :  { %561 = dma.done.wait [#allocation12], 32  }
  0x91   :  { %562 = vsyncadd [#allocation12], 4294967264 }
  0x92   :  { %563 = dma.done.wait [#allocation15], 16  }
  0x93   :  { %564 = vsyncadd [#allocation15], 4294967280  ;;  %v127_v0 = vld [vmem:[#allocation7] sm:$0x1]  ;;  %v129_v1 = vld [vmem:[#allocation7 + $0x1] sm:$0x1]  ;;  %v170_v14 = vlaneseq }
  0x94   :  { %v128_v2 = vmul.f32 0.0078125, %v127_v0  ;;  %v130_v3 = vmul.f32 0.0078125, %v129_v1  ;;  %v140_v4 = vld [vmem:[#allocation8] sm:$0x1]  ;;  %v142_v6 = vld [vmem:[#allocation8 + $0x1] sm:$0x1] }
  0x95   :  { %v141_v5 = vmul.f32 0.0078125, %v140_v4  ;;  %v143_v8 = vmul.f32 0.0078125, %v142_v6  ;;  %v171_v15 = vshrl.u32 %v170_v14, 7  ;;  %v133_v16 = vld [vmem:[#allocation10] sm:$0x1]  ;;  %v153_v23 = vld [vmem:[#allocation2] sm:$0xff] }
  0x96   :  { %v131_v7 = vmul.f32 %v128_v2, %v128_v2  ;;  %v146_v17 = vld [vmem:[#allocation13] sm:$0x1]  ;;  %v137_v22 = vld [vmem:[#allocation11] sm:$0x1]  ;;  %v150_v25 = vld [vmem:[#allocation14] sm:$0x1] }
  0x97   :  { %v144_v9 = vmul.f32 %v141_v5, %v141_v5  ;;  %v172_v18 = vsub.s32 0, %v171_v15  ;;  %v154_v26 = vld [vmem:[#allocation2 + $0x8] sm:$0xff]  ;;  %v155_v27 = vld [vmem:[#allocation2 + $0x10] sm:$0xff]  ;;  %v213_v30 = vld [vmem:[#allocation5] sm:$0xff]  ;;  %s577_s7 = smov [#allocation16]  }
  0x98   :  { %v132_v10 = vsub.f32 %v130_v3, %v131_v7  ;;  %v214_v31 = vld [vmem:[#allocation5 + $0x8] sm:$0xff]  ;;  %v215_v32 = vld [vmem:[#allocation5 + $0x10] sm:$0xff]  ;;  %v156_v35 = vld [vmem:[#allocation2 + $0x18] sm:$0xff]  ;;  %s326_s10 = sshll.u32 %s577_s7, 4  ;;  %s327_s10 = int_to_ptr.vmem [resolvable:$true] %s326_s10 }
  0x99   :  { %v145_v11 = vsub.f32 %v143_v8, %v144_v9  ;;  %v216_v36 = vld [vmem:[#allocation5 + $0x18] sm:$0xff]  ;;  %v157_v37 = vld [vmem:[#allocation2 + $0x20] sm:$0xff]  ;;  %v158_v43 = vld [vmem:[#allocation2 + $0x28] sm:$0xff]  ;;  %s533_s11 = scalar_lea.vmem %s327_s10, 2048  ;;  %p538_p9 = scmp.lt.s32.totalorder %s327_s10, %s327_s10 }
  0x9a   :  { %v134_v12 = vadd.f32 1e-05, %v132_v10  ;;  %v217_v42 = vld [vmem:[#allocation5 + $0x20] sm:$0xff]  ;;  %v218_v44 = vld [vmem:[#allocation5 + $0x28] sm:$0xff]  ;;  %v159_v1 = vld [vmem:[#allocation2 + $0x30] sm:$0xff]  ;;  %p534_p8 = scmp.ne.s32.totalorder %s327_s10, %s533_s11  ;;  %p539_p10 = scmp.lt.s32.totalorder %s533_s11, %s533_s11 }
  0x9b   :  { %v147_v13 = vadd.f32 1e-05, %v145_v11  ;;  %v160_v11 = vld [vmem:[#allocation2 + $0x38] sm:$0xff] }
  0x9c   :  { %353 = vrsqrt.f32 %v134_v12  ;;  %v220_v12 = vld [vmem:[#allocation5 + $0x38] sm:$0xff]  ;;  %p540_p11 = por %p539_p10, %p538_p9 }
  0x9d   :  { %355 = vrsqrt.f32 %v147_v13 }
  0x9e   :  { %p541_p12 = pnand %p540_p11, %p534_p8 }
  0xa6   :  { %v354_v19 = vpop.eup %353 }
  0xa7   :  { %v356_v20 = vpop.eup %355  ;;  %v136_v21 = vmul.f32 %v354_v19, %v133_v16  ;;  %v162_v19 = vld [vmem:[#allocation2 + $0x48] sm:$0xff] }
  0xa8   :  { %v149_v24 = vmul.f32 %v356_v20, %v146_v17  ;;  %v161_v17 = vld [vmem:[#allocation2 + $0x40] sm:$0xff] }
  0xa9   :  { %v138_v28 = vmul.f32 %v136_v21, %v128_v2  ;;  %v732_v29 = vrot.slane %v136_v21, %v172_v18  ;;  %v219_v2 = vld [vmem:[#allocation5 + $0x30] sm:$0xff] }
  0xaa   :  { %v151_v33 = vmul.f32 %v149_v24, %v141_v5  ;;  %v734_v34 = vrot.slane %v149_v24, %v172_v18  ;;  %v222_v24 = vld [vmem:[#allocation5 + $0x48] sm:$0xff] }
  0xab   :  { %v139_v38 = vsub.f32 %v137_v22, %v138_v28  ;;  %v175_v39 = vmul.f32 %v732_v29, %v153_v23  ;;  %v176_v40 = vmul.f32 %v732_v29, %v154_v26  ;;  %v177_v41 = vmul.f32 %v732_v29, %v155_v27 }
  0xac   :  { %v152_v45 = vsub.f32 %v150_v25, %v151_v33  ;;  %v235_v46 = vmul.f32 %v734_v34, %v213_v30  ;;  %v236_v47 = vmul.f32 %v734_v34, %v214_v31  ;;  %v237_v48 = vmul.f32 %v734_v34, %v215_v32  ;;  %v163_v25 = vld [vmem:[#allocation2 + $0x50] sm:$0xff] }
  0xad   :  { %v742_v49 = vrot.slane %v139_v38, %v172_v18  ;;  %v178_v50 = vmul.f32 %v732_v29, %v156_v35  ;;  %v238_v51 = vmul.f32 %v734_v34, %v216_v36  ;;  %v179_v52 = vmul.f32 %v732_v29, %v157_v37 }
  0xae   :  { %v747_v53 = vrot.slane %v152_v45, %v172_v18  ;;  %v239_v54 = vmul.f32 %v734_v34, %v217_v42  ;;  %v180_v55 = vmul.f32 %v732_v29, %v158_v43  ;;  %v240_v56 = vmul.f32 %v734_v34, %v218_v44  ;;  %v221_v18 = vld [vmem:[#allocation5 + $0x40] sm:$0xff] }
  0xaf   :  { %v197_v57 = vadd.f32 %v742_v49, %v175_v39  ;;  %v198_v58 = vadd.f32 %v742_v49, %v176_v40  ;;  %v199_v59 = vadd.f32 %v742_v49, %v177_v41  ;;  %v200_v60 = vadd.f32 %v742_v49, %v178_v50  ;;  %v223_v40 = vld [vmem:[#allocation5 + $0x50] sm:$0xff]  ;;  %v164_v41 = vld [vmem:[#allocation2 + $0x58] sm:$0xff] }
  0xb0   :  { %v257_v61 = vadd.f32 %v747_v53, %v235_v46  ;;  %v258_v62 = vadd.f32 %v747_v53, %v236_v47  ;;  %v259_v63 = vadd.f32 %v747_v53, %v237_v48  ;;  %v260_v0 = vadd.f32 %v747_v53, %v238_v51  ;;  %v224_v46 = vld [vmem:[#allocation5 + $0x58] sm:$0xff]  ;;  %v165_v47 = vld [vmem:[#allocation2 + $0x60] sm:$0xff] }
  0xb1   :  { %v201_v3 = vadd.f32 %v742_v49, %v179_v52  ;;  %v261_v4 = vadd.f32 %v747_v53, %v239_v54  ;;  %v202_v5 = vadd.f32 %v742_v49, %v180_v55  ;;  %v262_v6 = vadd.f32 %v747_v53, %v240_v56  ;;  %v225_v48 = vld [vmem:[#allocation5 + $0x60] sm:$0xff] }
  0xb2   :  { %v273_v7 = vadd.f32 %v257_v61, %v197_v57  ;;  %v274_v8 = vadd.f32 %v258_v62, %v198_v58  ;;  %v275_v9 = vadd.f32 %v259_v63, %v199_v59  ;;  %v276_v10 = vadd.f32 %v260_v0, %v200_v60  ;;  %v166_v63 = vld [vmem:[#allocation2 + $0x68] sm:$0xff] }
  0xb3   :  { %v277_v13 = vadd.f32 %v261_v4, %v201_v3  ;;  %v278_v14 = vadd.f32 %v262_v6, %v202_v5  ;;  %v181_v15 = vmul.f32 %v732_v29, %v159_v1  ;;  %v241_v16 = vmul.f32 %v734_v34, %v219_v2  ;;  %v226_v0 = vld [vmem:[#allocation5 + $0x68] sm:$0xff]  ;;  %v167_v1 = vld [vmem:[#allocation2 + $0x70] sm:$0xff] }
  0xb4   :  { %v289_v20 = vmax.f32 %v273_v7, 0.0  ;;  %v290_v21 = vmax.f32 %v274_v8, 0.0  ;;  %v291_v22 = vmax.f32 %v275_v9, 0.0  ;;  %v292_v23 = vmax.f32 %v276_v10, 0.0  ;;  %v227_v6 = vld [vmem:[#allocation5 + $0x70] sm:$0xff]  ;;  %v168_v7 = vld [vmem:[#allocation2 + $0x78] sm:$0xff] }
  0xb5   :  { %v293_v26 = vmax.f32 %v277_v13, 0.0  ;;  %v294_v27 = vmax.f32 %v278_v14, 0.0  ;;  %v203_v28 = vadd.f32 %v742_v49, %v181_v15  ;;  %v263_v30 = vadd.f32 %v747_v53, %v241_v16 }
  0xb6   :  { %305 = vst [vmem:[#allocation16] sm:$0xff] %v289_v20  ;;  %306 = vst [vmem:[#allocation16 + $0x8] sm:$0xff] %v290_v21  ;;  %v182_v31 = vmul.f32 %v732_v29, %v160_v11  ;;  %v242_v32 = vmul.f32 %v734_v34, %v220_v12  ;;  %v183_v33 = vmul.f32 %v732_v29, %v161_v17  ;;  %v228_v20 = vld [vmem:[#allocation5 + $0x78] sm:$0xff] }
  0xb7   :  { %307 = vst [vmem:[#allocation16 + $0x10] sm:$0xff] %v291_v22  ;;  %308 = vst [vmem:[#allocation16 + $0x18] sm:$0xff] %v292_v23  ;;  %v243_v35 = vmul.f32 %v734_v34, %v221_v18  ;;  %v279_v36 = vadd.f32 %v263_v30, %v203_v28  ;;  %v184_v37 = vmul.f32 %v732_v29, %v162_v19 }
  0xb8   :  { %309 = vst [vmem:[#allocation16 + $0x20] sm:$0xff] %v293_v26  ;;  %310 = vst [vmem:[#allocation16 + $0x28] sm:$0xff] %v294_v27  ;;  %v244_v38 = vmul.f32 %v734_v34, %v222_v24  ;;  %v185_v39 = vmul.f32 %v732_v29, %v163_v25  ;;  %v204_v42 = vadd.f32 %v742_v49, %v182_v31 }
  0xb9   :  { %v264_v43 = vadd.f32 %v747_v53, %v242_v32  ;;  %v205_v44 = vadd.f32 %v742_v49, %v183_v33  ;;  %v265_v45 = vadd.f32 %v747_v53, %v243_v35  ;;  %v295_v50 = vmax.f32 %v279_v36, 0.0 }
  0xba   :  { %v206_v51 = vadd.f32 %v742_v49, %v184_v37  ;;  %v266_v52 = vadd.f32 %v747_v53, %v244_v38  ;;  %v207_v54 = vadd.f32 %v742_v49, %v185_v39  ;;  %v245_v57 = vmul.f32 %v734_v34, %v223_v40 }
  0xbb   :  { %v280_v55 = vadd.f32 %v264_v43, %v204_v42  ;;  %v281_v56 = vadd.f32 %v265_v45, %v205_v44  ;;  %v186_v58 = vmul.f32 %v732_v29, %v164_v41  ;;  %311 = vst [vmem:[#allocation16 + $0x30] sm:$0xff] %v295_v50  ;;  %v246_v60 = vmul.f32 %v734_v34, %v224_v46 }
  0xbc   :  { %v282_v59 = vadd.f32 %v266_v52, %v206_v51  ;;  %v187_v61 = vmul.f32 %v732_v29, %v165_v47  ;;  %v247_v62 = vmul.f32 %v734_v34, %v225_v48  ;;  %v267_v4 = vadd.f32 %v747_v53, %v245_v57 }
  0xbd   :  { %v296_v2 = vmax.f32 %v280_v55, 0.0  ;;  %v297_v3 = vmax.f32 %v281_v56, 0.0  ;;  %v208_v5 = vadd.f32 %v742_v49, %v186_v58  ;;  %v268_v9 = vadd.f32 %v747_v53, %v246_v60 }
  0xbe   :  { %v298_v8 = vmax.f32 %v282_v59, 0.0  ;;  %v209_v10 = vadd.f32 %v742_v49, %v187_v61  ;;  %v269_v11 = vadd.f32 %v747_v53, %v247_v62  ;;  %v283_v12 = vadd.f32 %v267_v4, %v207_v54 }
  0xbf   :  { %312 = vst [vmem:[#allocation16 + $0x38] sm:$0xff] %v296_v2  ;;  %313 = vst [vmem:[#allocation16 + $0x40] sm:$0xff] %v297_v3  ;;  %v188_v13 = vmul.f32 %v732_v29, %v166_v63  ;;  %v248_v14 = vmul.f32 %v734_v34, %v226_v0  ;;  %v189_v15 = vmul.f32 %v732_v29, %v167_v1 }
  0xc0   :  { %314 = vst [vmem:[#allocation16 + $0x48] sm:$0xff] %v298_v8  ;;  %v284_v16 = vadd.f32 %v268_v9, %v208_v5  ;;  %v285_v17 = vadd.f32 %v269_v11, %v209_v10  ;;  %v249_v18 = vmul.f32 %v734_v34, %v227_v6  ;;  %v190_v19 = vmul.f32 %v732_v29, %v168_v7 }
  0xc1   :  { %v299_v21 = vmax.f32 %v283_v12, 0.0  ;;  %v210_v22 = vadd.f32 %v742_v49, %v188_v13  ;;  %v270_v23 = vadd.f32 %v747_v53, %v248_v14  ;;  %v211_v24 = vadd.f32 %v742_v49, %v189_v15 }
  0xc2   :  { %v300_v25 = vmax.f32 %v284_v16, 0.0  ;;  %v301_v26 = vmax.f32 %v285_v17, 0.0  ;;  %v271_v27 = vadd.f32 %v747_v53, %v249_v18  ;;  %v212_v30 = vadd.f32 %v742_v49, %v190_v19 }
  0xc3   :  { %315 = vst [vmem:[#allocation16 + $0x50] sm:$0xff] %v299_v21  ;;  %v286_v28 = vadd.f32 %v270_v23, %v210_v22  ;;  %v250_v31 = vmul.f32 %v734_v34, %v228_v20 }
  0xc4   :  { %316 = vst [vmem:[#allocation16 + $0x58] sm:$0xff] %v300_v25  ;;  %317 = vst [vmem:[#allocation16 + $0x60] sm:$0xff] %v301_v26  ;;  %v287_v29 = vadd.f32 %v271_v27, %v211_v24 }
  0xc5   :  { %v302_v32 = vmax.f32 %v286_v28, 0.0  ;;  %v272_v33 = vadd.f32 %v747_v53, %v250_v31 }
  0xc6   :  { %v303_v35 = vmax.f32 %v287_v29, 0.0 }
  0xc7   :  { %318 = vst [vmem:[#allocation16 + $0x68] sm:$0xff] %v302_v32  ;;  %v288_v36 = vadd.f32 %v272_v33, %v212_v30 }
  0xc8   :  { %319 = vst [vmem:[#allocation16 + $0x70] sm:$0xff] %v303_v35 }
  0xc9   :  { %v304_v37 = vmax.f32 %v288_v36, 0.0 }
  0xcb   :  { %320 = vst [vmem:[#allocation16 + $0x78] sm:$0xff] %v304_v37 }
  0xcc   :  { %544 = shalt.err (!%p541_p12)
}
  0xcd   :  { %s545_s16 = scalar_lea.hbm %s827_s8, 2048 }
  0xce   :  { %p546_p13 = scmp.ne.s32.totalorder %s827_s8, %s545_s16  ;;  %p549_p0 = scmp.lt.u32.totalorder %s545_s16, %s827_s8 }
  0xd0   :  { %p551_p1 = pnand %p549_p0, %p546_p13 }
  0xd2   :  { %554 = shalt.err (!%p551_p1)
}
  0xd3   :  { %332 = dma.vmem_to_hbm [thread:$0]  %s327_s10, 2048, %s827_s8, [#allocation4], %s569_s17, %s569_s17, %s570_s18  }
  0xd4   :  { %565 = dma.done.wait [#allocation4], 2048  }
  0xd5   :  { %566 = vsyncadd [#allocation4], 4294965248 }
  0xd6   :  { %336 = vsyncpa [#allocation3], 1 }
  0xd7   :  { %337 = vsyncpa [#allocation6], 1 }
  0xd8   :  { %338 = vsyncpa [#allocation9], 1 }
  0xd9   :  { %339 = vsyncpa [#allocation12], 1 }
  0xda   :  { %340 = vsyncpa [#allocation15], 1 }
  0xdb   :  { %341 = vsyncpa [#allocation4], 1 }

// kernel: resblock_forward.6
= control target key start
LH: loop header
LB: loop body
LE: loop exit
PB: predicated region body
PF: predicated region fallthrough
CT: control target
= control target key end

     0   :  { %13 = vsyncpa [#allocation3], 0  ;;  %s1391_s0 = inlined_call_operand.hbm [shape: bf16[128,128], index: 0, kind: input, shape index: {}]   ;;  %s1392_s1 = inlined_call_operand.hbm [shape: bf16[128,128], index: 1, kind: input, shape index: {}]   ;;  %s1393_s2 = inlined_call_operand.hbm [shape: bf16[128,128], index: 2, kind: input, shape index: {}]   ;;  %s1394_s3 = inlined_call_operand.hbm [shape: bf16[128,128], index: 3, kind: input, shape index: {}]   ;;  %s1395_s4 = inlined_call_operand.hbm [shape: f32[128,128], index: 4, kind: output, shape index: {0}]   ;;  %s1396_s5 = inlined_call_operand.hbm [shape: f32[128,128], index: 5, kind: output, shape index: {1}]   ;;  %s1397_s6 = inlined_call_operand.hbm [shape: f32[8,128], index: 6, kind: output, shape index: {2}]   ;;  %s1398_s7 = inlined_call_operand.hbm [shape: f32[8,128], index: 7, kind: output, shape index: {3}]  }
   0x1   :  { %14 = vsyncpa [#allocation6], 0 }
   0x2   :  { %15 = vsyncpa [#allocation9], 0 }
   0x3   :  { %16 = vsyncpa [#allocation4], 0 }
   0x4   :  { %17 = vsyncpa [#allocation12], 0 }
   0x5   :  { %18 = vsyncpa [#allocation15], 0  ;;  %s1202_s24 = smov [#allocation5]   ;;  %s1203_s26 = smov [#allocation2]  }
   0x6   :  { %s36_s25 = sshll.u32 %s1202_s24, 4  ;;  %s24_s27 = sshll.u32 %s1203_s26, 4  ;;  %s37_s25 = int_to_ptr.vmem [resolvable:$true] %s36_s25  ;;  %s1255_s27 = int_to_ptr.vmem [resolvable:$true] %s24_s27 }
   0x7   :  { %s1014_s30 = scalar_lea.hbm %s1392_s1, 1024 }
   0x8   :  { %p1015_p0 = scmp.ne.s32.totalorder %s1392_s1, %s1014_s30  ;;  %p1018_p1 = scmp.lt.u32.totalorder %s1014_s30, %s1392_s1 }
   0xa   :  { %p1020_p2 = pnand %p1018_p1, %p1015_p0 }
   0xc   :  { %1023 = shalt.err (!%p1020_p2)
}
   0xd   :  { %s1024_s12 = scalar_lea.vmem %s37_s25, 1024  ;;  %p1029_p4 = scmp.lt.s32.totalorder %s37_s25, %s37_s25 }
   0xe   :  { %p1025_p3 = scmp.ne.s32.totalorder %s37_s25, %s1024_s12  ;;  %p1030_p5 = scmp.lt.s32.totalorder %s1024_s12, %s1024_s12 }
  0x10   :  { %p1031_p6 = por %p1030_p5, %p1029_p4 }
  0x12   :  { %p1032_p7 = pnand %p1031_p6, %p1025_p3 }
  0x14   :  { %1035 = shalt.err (!%p1032_p7)
}
  0x15   :  { %s1204_s13 = smov 64   ;;  %s1205_s14 = smov 4  }
  0x16   :  { %42 = dma.hbm_to_vmem [thread:$0]  %s1392_s1, 1024, %s37_s25, [#allocation6], %s1204_s13, %s1204_s13, %s1205_s14  }
  0x17   :  { %s1036_s19 = scalar_lea.hbm %s1391_s0, 1024 }
  0x18   :  { %p1037_p8 = scmp.ne.s32.totalorder %s1391_s0, %s1036_s19  ;;  %p1040_p9 = scmp.lt.u32.totalorder %s1036_s19, %s1391_s0 }
  0x1a   :  { %p1042_p10 = pnand %p1040_p9, %p1037_p8 }
  0x1c   :  { %1045 = shalt.err (!%p1042_p10)
}
  0x1d   :  { %s1046_s24 = scalar_lea.vmem %s1255_s27, 1024  ;;  %p1051_p12 = scmp.lt.s32.totalorder %s1255_s27, %s1255_s27 }
  0x1e   :  { %p1047_p11 = scmp.ne.s32.totalorder %s1255_s27, %s1046_s24  ;;  %p1052_p13 = scmp.lt.s32.totalorder %s1046_s24, %s1046_s24 }
  0x20   :  { %p1053_p0 = por %p1052_p13, %p1051_p12 }
  0x22   :  { %p1054_p1 = pnand %p1053_p0, %p1047_p11 }
  0x24   :  { %1057 = shalt.err (!%p1054_p1)
}
  0x25   :  { %30 = dma.hbm_to_vmem [thread:$0]  %s1391_s0, 1024, %s1255_s27, [#allocation3], %s1204_s13, %s1204_s13, %s1205_s14  }
  0x26   :  { %s1206_s26 = smov [#allocation7]   ;;  %s1207_s29 = smov [#allocation8]  }
  0x27   :  { %s48_s28 = sshll.u32 %s1206_s26, 4  ;;  %s60_s30 = sshll.u32 %s1207_s29, 4  ;;  %s49_s28 = int_to_ptr.vmem [resolvable:$true] %s48_s28  ;;  %s1292_s30 = int_to_ptr.vmem [resolvable:$true] %s60_s30 }
  0x28   :  { %s1058_s10 = scalar_lea.hbm %s1393_s2, 1024 }
  0x29   :  { %p1059_p2 = scmp.ne.s32.totalorder %s1393_s2, %s1058_s10  ;;  %p1062_p3 = scmp.lt.u32.totalorder %s1058_s10, %s1393_s2 }
  0x2b   :  { %p1064_p4 = pnand %p1062_p3, %p1059_p2 }
  0x2d   :  { %1067 = shalt.err (!%p1064_p4)
}
  0x2e   :  { %s1068_s0 = scalar_lea.vmem %s49_s28, 1024  ;;  %p1073_p6 = scmp.lt.s32.totalorder %s49_s28, %s49_s28 }
  0x2f   :  { %p1069_p5 = scmp.ne.s32.totalorder %s49_s28, %s1068_s0  ;;  %p1074_p7 = scmp.lt.s32.totalorder %s1068_s0, %s1068_s0 }
  0x31   :  { %p1075_p8 = por %p1074_p7, %p1073_p6 }
  0x33   :  { %p1076_p9 = pnand %p1075_p8, %p1069_p5 }
  0x35   :  { %1079 = shalt.err (!%p1076_p9)
}
  0x36   :  { %54 = dma.hbm_to_vmem [thread:$0]  %s1393_s2, 1024, %s49_s28, [#allocation6], %s1204_s13, %s1204_s13, %s1205_s14  }
  0x37   :  { %s1080_s20 = scalar_lea.hbm %s1394_s3, 1024 }
  0x38   :  { %p1081_p10 = scmp.ne.s32.totalorder %s1394_s3, %s1080_s20  ;;  %p1084_p11 = scmp.lt.u32.totalorder %s1080_s20, %s1394_s3 }
  0x3a   :  { %p1086_p12 = pnand %p1084_p11, %p1081_p10 }
  0x3c   :  { %1089 = shalt.err (!%p1086_p12)
}
  0x3d   :  { %s1090_s1 = scalar_lea.vmem %s1292_s30, 1024  ;;  %p1095_p0 = scmp.lt.s32.totalorder %s1292_s30, %s1292_s30 }
  0x3e   :  { %p1091_p13 = scmp.ne.s32.totalorder %s1292_s30, %s1090_s1  ;;  %p1096_p1 = scmp.lt.s32.totalorder %s1090_s1, %s1090_s1 }
  0x40   :  { %p1097_p2 = por %p1096_p1, %p1095_p0 }
  0x42   :  { %p1098_p3 = pnand %p1097_p2, %p1091_p13 }
  0x44   :  { %1101 = shalt.err (!%p1098_p3)
}
  0x45   :  { %66 = dma.hbm_to_vmem [thread:$0]  %s1394_s3, 1024, %s1292_s30, [#allocation9], %s1204_s13, %s1204_s13, %s1205_s14  }
  0x46   :  { %1190 = dma.done.wait [#allocation3], 1024  }
  0x47   :  { %1191 = vsyncadd [#allocation3], 4294966272 }
  0x48   :  { %1192 = dma.done.wait [#allocation6], 2048  }
  0x49   :  { %1193 = vsyncadd [#allocation6], 4294965248 }
  0x4a   :  { %1194 = dma.done.wait [#allocation9], 1024  }
  0x4b   :  { %1195 = vsyncadd [#allocation9], 4294966272  ;;  %v982_v0 = vld [vmem:[#allocation5] sm:$0xff]   ;;  %v984_v2 = vld [vmem:[#allocation5 + $0x8] sm:$0xff]   ;;  %v1208_v32 = vmov 0.0   ;;  %s1209_s3 = smov [#allocation10]  }
  0x4c   :  { %v983_v1 = vld [vmem:[#allocation8] sm:$0xff]   ;;  %905 = vmatprep.subr.bf16.mxu0 %v982_v0  ;;  %v985_v3 = vld [vmem:[#allocation8 + $0x8] sm:$0xff]   ;;  %v986_v4 = vld [vmem:[#allocation5 + $0x10] sm:$0xff]   ;;  %566 = vst [vmem:[#allocation13] sm:$0xff] %v1208_v32  ;;  %s784_s13 = sshll.u32 %s1209_s3, 4  ;;  %s1210_s14 = smov [#allocation11]   ;;  %s1329_s13 = int_to_ptr.vmem [resolvable:$true] %s784_s13 }
  0x4d   :  { %937 = vmatprep.subr.bf16.mxu1 %v983_v1  ;;  %906 = vmatpush3.bf16.msra.mxu0 %v982_v0  ;;  %v987_v5 = vld [vmem:[#allocation8 + $0x10] sm:$0xff]   ;;  %v988_v6 = vld [vmem:[#allocation5 + $0x18] sm:$0xff]   ;;  %v990_v8 = vld [vmem:[#allocation5 + $0x20] sm:$0xff]   ;;  %567 = vst [vmem:[#allocation14] sm:$0xff] %v1208_v32  ;;  %s796_s26 = sshll.u32 %s1210_s14, 4  ;;  %s1102_s28 = scalar_lea.vmem %s1329_s13, 2048  ;;  %s1331_s26 = int_to_ptr.vmem [resolvable:$true] %s796_s26 }
  0x4e   :  { %938 = vmatpush3.bf16.msra.mxu1 %v983_v1  ;;  %907 = vmatprep.subr.bf16.mxu0 %v984_v2  ;;  %v989_v7 = vld [vmem:[#allocation8 + $0x18] sm:$0xff]   ;;  %v991_v9 = vld [vmem:[#allocation8 + $0x20] sm:$0xff]   ;;  %v992_v10 = vld [vmem:[#allocation5 + $0x28] sm:$0xff]   ;;  %p1103_p4 = scmp.ne.s32.totalorder %s1329_s13, %s1102_s28  ;;  %p1107_p5 = scmp.lt.s32.totalorder %s1329_s13, %s1329_s13 }
  0x4f   :  { %939 = vmatprep.subr.bf16.mxu1 %v985_v3  ;;  %v993_v11 = vld [vmem:[#allocation8 + $0x28] sm:$0xff]   ;;  %v998_v12 = vld [vmem:[#allocation2] sm:$0xff]   ;;  %v994_v14 = vld [vmem:[#allocation5 + $0x30] sm:$0xff]   ;;  %p1108_p6 = scmp.lt.s32.totalorder %s1102_s28, %s1102_s28 }
  0x50   :  { %v999_v13 = vld [vmem:[#allocation7] sm:$0xff]   ;;  %921 = vmatprep.mubr.bf16.mxu0 %v998_v12  ;;  %v995_v15 = vld [vmem:[#allocation8 + $0x30] sm:$0xff]   ;;  %v996_v16 = vld [vmem:[#allocation5 + $0x38] sm:$0xff]  }
  0x51   :  { %908 = vmatpush3.bf16.msra.mxu0 %v984_v2  ;;  %953 = vmatprep.mubr.bf16.mxu1 %v999_v13  ;;  %v997_v17 = vld [vmem:[#allocation8 + $0x38] sm:$0xff]   ;;  %v1000_v18 = vld [vmem:[#allocation2 + $0x8] sm:$0xff]   ;;  %v1002_v20 = vld [vmem:[#allocation2 + $0x10] sm:$0xff]   ;;  %p1109_p7 = por %p1108_p6, %p1107_p5 }
  0x52   :  { %940 = vmatpush3.bf16.msra.mxu1 %v985_v3  ;;  %909 = vmatprep.subr.bf16.mxu0 %v986_v4  ;;  %v1001_v19 = vld [vmem:[#allocation7 + $0x8] sm:$0xff]   ;;  %v1003_v21 = vld [vmem:[#allocation7 + $0x10] sm:$0xff]   ;;  %v1004_v22 = vld [vmem:[#allocation2 + $0x18] sm:$0xff]  }
  0x53   :  { %941 = vmatprep.subr.bf16.mxu1 %v987_v5  ;;  %v1005_v23 = vld [vmem:[#allocation7 + $0x18] sm:$0xff]   ;;  %v1006_v24 = vld [vmem:[#allocation2 + $0x20] sm:$0xff]   ;;  %v1008_v26 = vld [vmem:[#allocation2 + $0x28] sm:$0xff]   ;;  %p1110_p8 = pnand %p1109_p7, %p1103_p4 }
  0x54   :  { %v1007_v25 = vld [vmem:[#allocation7 + $0x20] sm:$0xff]   ;;  %v1009_v27 = vld [vmem:[#allocation7 + $0x28] sm:$0xff]   ;;  %v1010_v28 = vld [vmem:[#allocation2 + $0x30] sm:$0xff]  }
  0x55   :  { %910 = vmatpush3.bf16.msra.mxu0 %v986_v4  ;;  %v1011_v29 = vld [vmem:[#allocation7 + $0x30] sm:$0xff]   ;;  %v1012_v30 = vld [vmem:[#allocation2 + $0x38] sm:$0xff]  }
  0x56   :  { %942 = vmatpush3.bf16.msra.mxu1 %v987_v5  ;;  %911 = vmatprep.subr.bf16.mxu0 %v988_v6  ;;  %v1013_v31 = vld [vmem:[#allocation7 + $0x38] sm:$0xff]  }
  0x57   :  { %943 = vmatprep.subr.bf16.mxu1 %v989_v7 }
  0x59   :  { %912 = vmatpush3.bf16.msra.mxu0 %v988_v6 }
  0x5a   :  { %944 = vmatpush3.bf16.msra.mxu1 %v989_v7  ;;  %913 = vmatprep.subr.bf16.mxu0 %v990_v8 }
  0x5b   :  { %945 = vmatprep.subr.bf16.mxu1 %v991_v9 }
  0x5d   :  { %914 = vmatpush3.bf16.msra.mxu0 %v990_v8 }
  0x5e   :  { %946 = vmatpush3.bf16.msra.mxu1 %v991_v9  ;;  %915 = vmatprep.subr.bf16.mxu0 %v992_v10 }
  0x5f   :  { %947 = vmatprep.subr.bf16.mxu1 %v993_v11 }
  0x61   :  { %916 = vmatpush3.bf16.msra.mxu0 %v992_v10 }
  0x62   :  { %948 = vmatpush3.bf16.msra.mxu1 %v993_v11  ;;  %917 = vmatprep.subr.bf16.mxu0 %v994_v14 }
  0x63   :  { %949 = vmatprep.subr.bf16.mxu1 %v995_v15 }
  0x65   :  { %918 = vmatpush3.bf16.msra.mxu0 %v994_v14 }
  0x66   :  { %950 = vmatpush3.bf16.msra.mxu1 %v995_v15  ;;  %919 = vmatprep.subr.bf16.mxu0 %v996_v16 }
  0x67   :  { %951 = vmatprep.subr.bf16.mxu1 %v997_v17 }
  0x69   :  { %920 = vmatpush3.bf16.msra.mxu0 %v996_v16 }
  0x6a   :  { %952 = vmatpush3.bf16.msra.mxu1 %v997_v17 }
  0x6c   :  { %922 = vmatmul.mubr.bf16.vlgmr.msra.gmra.mrb[0].mxu0 %v1000_v18 }
  0x6d   :  { %954 = vmatmul.mubr.bf16.vlgmr.msra.gmra.mrb[0].mxu1 %v1001_v19  ;;  %925 = vmatprep.mubr.bf16.mxu0 %v1002_v20 }
  0x6e   :  { %957 = vmatprep.mubr.bf16.mxu1 %v1003_v21 }
  0x74   :  { %926 = vmatmul.mubr.bf16.gmra.mrb[4].mxu0 %v1004_v22 }
  0x75   :  { %958 = vmatmul.mubr.bf16.gmra.mrb[4].mxu1 %v1005_v23  ;;  %929 = vmatprep.mubr.bf16.mxu0 %v1006_v24 }
  0x76   :  { %961 = vmatprep.mubr.bf16.mxu1 %v1007_v25 }
  0x7c   :  { %930 = vmatmul.mubr.bf16.gmra.mrb[8].mxu0 %v1008_v26 }
  0x7d   :  { %962 = vmatmul.mubr.bf16.gmra.mrb[8].mxu1 %v1009_v27  ;;  %933 = vmatprep.mubr.bf16.mxu0 %v1010_v28 }
  0x7e   :  { %965 = vmatprep.mubr.bf16.mxu1 %v1011_v29 }
  0x84   :  { %934 = vmatmul.mubr.bf16.gmra.mrb[12].mxu0 %v1012_v30 }
  0x85   :  { %966 = vmatmul.mubr.bf16.gmra.mrb[12].mxu1 %v1013_v31 }
 0x13f   :  { %v923_v33 = vpop.f32.mrb[0].mxu0 }
 0x140   :  { %532 = vst [vmem:[#allocation10 + $0x10] sm:$0xff] %v923_v33  ;;  %v955_v34 = vpop.f32.mrb[0].mxu1  ;;  %v242_v35 = vpop.f32.mrb[1].mxu0  ;;  %v678_v47 = vmul.f32 %v923_v33, %v923_v33 }
 0x141   :  { %548 = vst [vmem:[#allocation11 + $0x10] sm:$0xff] %v955_v34  ;;  %530 = vst [vmem:[#allocation10] sm:$0xff] %v242_v35  ;;  %v467_v36 = vpop.f32.mrb[1].mxu1  ;;  %v924_v37 = vpop.f32.mrb[2].mxu0  ;;  %v676_v40 = vmul.f32 %v242_v35, %v242_v35  ;;  %v742_v50 = vmul.f32 %v955_v34, %v955_v34 }
 0x142   :  { %546 = vst [vmem:[#allocation11] sm:$0xff] %v467_v36  ;;  %533 = vst [vmem:[#allocation10 + $0x18] sm:$0xff] %v924_v37  ;;  %v956_v38 = vpop.f32.mrb[2].mxu1  ;;  %v245_v39 = vpop.f32.mrb[3].mxu0  ;;  %v740_v44 = vmul.f32 %v467_v36, %v467_v36  ;;  %v679_v53 = vmul.f32 %v924_v37, %v924_v37 }
 0x143   :  { %549 = vst [vmem:[#allocation11 + $0x18] sm:$0xff] %v956_v38  ;;  %531 = vst [vmem:[#allocation10 + $0x8] sm:$0xff] %v245_v39  ;;  %v652_v41 = vadd.f32 %v245_v39, %v242_v35  ;;  %v677_v42 = vmul.f32 %v245_v39, %v245_v39  ;;  %v470_v43 = vpop.f32.mrb[3].mxu1  ;;  %v743_v57 = vmul.f32 %v956_v38, %v956_v38 }
 0x144   :  { %547 = vst [vmem:[#allocation11 + $0x8] sm:$0xff] %v470_v43  ;;  %v716_v45 = vadd.f32 %v470_v43, %v467_v36  ;;  %v741_v46 = vmul.f32 %v470_v43, %v470_v43 }
 0x145   :  { %v653_v48 = vadd.f32 %v923_v33, %v652_v41  ;;  %v692_v49 = vadd.f32 %v677_v42, %v676_v40 }
 0x146   :  { %v717_v51 = vadd.f32 %v955_v34, %v716_v45  ;;  %v756_v52 = vadd.f32 %v741_v46, %v740_v44 }
 0x147   :  { %v693_v54 = vadd.f32 %v692_v49, %v678_v47  ;;  %v927_v55 = vpop.f32.mrb[4].mxu0  ;;  %v654_v56 = vadd.f32 %v924_v37, %v653_v48 }
 0x148   :  { %v757_v58 = vadd.f32 %v756_v52, %v742_v50  ;;  %536 = vst [vmem:[#allocation10 + $0x30] sm:$0xff] %v927_v55  ;;  %v959_v59 = vpop.f32.mrb[4].mxu1  ;;  %v258_v60 = vpop.f32.mrb[5].mxu0  ;;  %v718_v61 = vadd.f32 %v956_v38, %v717_v51  ;;  %v682_v15 = vmul.f32 %v927_v55, %v927_v55 }
 0x149   :  { %552 = vst [vmem:[#allocation11 + $0x30] sm:$0xff] %v959_v59  ;;  %534 = vst [vmem:[#allocation10 + $0x20] sm:$0xff] %v258_v60  ;;  %v655_v62 = vadd.f32 %v654_v56, %v258_v60  ;;  %v680_v63 = vmul.f32 %v258_v60, %v258_v60  ;;  %v694_v0 = vadd.f32 %v693_v54, %v679_v53  ;;  %v483_v1 = vpop.f32.mrb[5].mxu1  ;;  %v928_v2 = vpop.f32.mrb[6].mxu0 }
 0x14a   :  { %550 = vst [vmem:[#allocation11 + $0x20] sm:$0xff] %v483_v1  ;;  %v719_v3 = vadd.f32 %v718_v61, %v483_v1  ;;  %v744_v4 = vmul.f32 %v483_v1, %v483_v1  ;;  %v758_v5 = vadd.f32 %v757_v58, %v743_v57  ;;  %537 = vst [vmem:[#allocation10 + $0x38] sm:$0xff] %v928_v2  ;;  %v960_v6 = vpop.f32.mrb[6].mxu1  ;;  %v261_v7 = vpop.f32.mrb[7].mxu0 }
 0x14b   :  { %v695_v8 = vadd.f32 %v694_v0, %v680_v63  ;;  %553 = vst [vmem:[#allocation11 + $0x38] sm:$0xff] %v960_v6  ;;  %535 = vst [vmem:[#allocation10 + $0x28] sm:$0xff] %v261_v7  ;;  %v656_v9 = vadd.f32 %v655_v62, %v261_v7  ;;  %v681_v10 = vmul.f32 %v261_v7, %v261_v7  ;;  %v486_v11 = vpop.f32.mrb[7].mxu1 }
 0x14c   :  { %v759_v12 = vadd.f32 %v758_v5, %v744_v4  ;;  %551 = vst [vmem:[#allocation11 + $0x28] sm:$0xff] %v486_v11  ;;  %v720_v13 = vadd.f32 %v719_v3, %v486_v11  ;;  %v745_v14 = vmul.f32 %v486_v11, %v486_v11  ;;  %v746_v18 = vmul.f32 %v959_v59, %v959_v59 }
 0x14d   :  { %v657_v16 = vadd.f32 %v927_v55, %v656_v9  ;;  %v696_v17 = vadd.f32 %v695_v8, %v681_v10  ;;  %v683_v21 = vmul.f32 %v928_v2, %v928_v2  ;;  %v747_v25 = vmul.f32 %v960_v6, %v960_v6 }
 0x14e   :  { %v721_v19 = vadd.f32 %v959_v59, %v720_v13  ;;  %v760_v20 = vadd.f32 %v759_v12, %v745_v14 }
 0x14f   :  { %v697_v22 = vadd.f32 %v696_v17, %v682_v15  ;;  %v931_v23 = vpop.f32.mrb[8].mxu0  ;;  %v658_v24 = vadd.f32 %v928_v2, %v657_v16 }
 0x150   :  { %v761_v26 = vadd.f32 %v760_v20, %v746_v18  ;;  %540 = vst [vmem:[#allocation10 + $0x50] sm:$0xff] %v931_v23  ;;  %v963_v27 = vpop.f32.mrb[8].mxu1  ;;  %v274_v28 = vpop.f32.mrb[9].mxu0  ;;  %v722_v29 = vadd.f32 %v960_v6, %v721_v19  ;;  %v686_v47 = vmul.f32 %v931_v23, %v931_v23 }
 0x151   :  { %556 = vst [vmem:[#allocation11 + $0x50] sm:$0xff] %v963_v27  ;;  %538 = vst [vmem:[#allocation10 + $0x40] sm:$0xff] %v274_v28  ;;  %v659_v30 = vadd.f32 %v658_v24, %v274_v28  ;;  %v684_v31 = vmul.f32 %v274_v28, %v274_v28  ;;  %v698_v32 = vadd.f32 %v697_v22, %v683_v21  ;;  %v499_v33 = vpop.f32.mrb[9].mxu1  ;;  %v932_v34 = vpop.f32.mrb[10].mxu0 }
 0x152   :  { %554 = vst [vmem:[#allocation11 + $0x40] sm:$0xff] %v499_v33  ;;  %v723_v35 = vadd.f32 %v722_v29, %v499_v33  ;;  %v748_v36 = vmul.f32 %v499_v33, %v499_v33  ;;  %v762_v37 = vadd.f32 %v761_v26, %v747_v25  ;;  %541 = vst [vmem:[#allocation10 + $0x58] sm:$0xff] %v932_v34  ;;  %v964_v38 = vpop.f32.mrb[10].mxu1  ;;  %v277_v39 = vpop.f32.mrb[11].mxu0 }
 0x153   :  { %v699_v40 = vadd.f32 %v698_v32, %v684_v31  ;;  %557 = vst [vmem:[#allocation11 + $0x58] sm:$0xff] %v964_v38  ;;  %539 = vst [vmem:[#allocation10 + $0x48] sm:$0xff] %v277_v39  ;;  %v660_v41 = vadd.f32 %v659_v30, %v277_v39  ;;  %v685_v42 = vmul.f32 %v277_v39, %v277_v39  ;;  %v502_v43 = vpop.f32.mrb[11].mxu1 }
 0x154   :  { %v763_v44 = vadd.f32 %v762_v37, %v748_v36  ;;  %555 = vst [vmem:[#allocation11 + $0x48] sm:$0xff] %v502_v43  ;;  %v724_v45 = vadd.f32 %v723_v35, %v502_v43  ;;  %v749_v46 = vmul.f32 %v502_v43, %v502_v43  ;;  %v750_v50 = vmul.f32 %v963_v27, %v963_v27 }
 0x155   :  { %v661_v48 = vadd.f32 %v931_v23, %v660_v41  ;;  %v700_v49 = vadd.f32 %v699_v40, %v685_v42  ;;  %v687_v53 = vmul.f32 %v932_v34, %v932_v34  ;;  %v751_v57 = vmul.f32 %v964_v38, %v964_v38 }
 0x156   :  { %v725_v51 = vadd.f32 %v963_v27, %v724_v45  ;;  %v764_v52 = vadd.f32 %v763_v44, %v749_v46 }
 0x157   :  { %v701_v54 = vadd.f32 %v700_v49, %v686_v47  ;;  %v935_v55 = vpop.f32.mrb[12].mxu0  ;;  %v662_v56 = vadd.f32 %v932_v34, %v661_v48 }
 0x158   :  { %v765_v58 = vadd.f32 %v764_v52, %v750_v50  ;;  %544 = vst [vmem:[#allocation10 + $0x70] sm:$0xff] %v935_v55  ;;  %v967_v59 = vpop.f32.mrb[12].mxu1  ;;  %v290_v60 = vpop.f32.mrb[13].mxu0  ;;  %v726_v61 = vadd.f32 %v964_v38, %v725_v51 }
 0x159   :  { %560 = vst [vmem:[#allocation11 + $0x70] sm:$0xff] %v967_v59  ;;  %542 = vst [vmem:[#allocation10 + $0x60] sm:$0xff] %v290_v60  ;;  %v663_v62 = vadd.f32 %v662_v56, %v290_v60  ;;  %v688_v63 = vmul.f32 %v290_v60, %v290_v60  ;;  %v702_v0 = vadd.f32 %v701_v54, %v687_v53  ;;  %v515_v1 = vpop.f32.mrb[13].mxu1  ;;  %v936_v2 = vpop.f32.mrb[14].mxu0 }
 0x15a   :  { %558 = vst [vmem:[#allocation11 + $0x60] sm:$0xff] %v515_v1  ;;  %v727_v3 = vadd.f32 %v726_v61, %v515_v1  ;;  %v752_v4 = vmul.f32 %v515_v1, %v515_v1  ;;  %v766_v5 = vadd.f32 %v765_v58, %v751_v57  ;;  %545 = vst [vmem:[#allocation10 + $0x78] sm:$0xff] %v936_v2  ;;  %v968_v6 = vpop.f32.mrb[14].mxu1  ;;  %v293_v7 = vpop.f32.mrb[15].mxu0 }
 0x15b   :  { %v703_v8 = vadd.f32 %v702_v0, %v688_v63  ;;  %561 = vst [vmem:[#allocation11 + $0x78] sm:$0xff] %v968_v6  ;;  %543 = vst [vmem:[#allocation10 + $0x68] sm:$0xff] %v293_v7  ;;  %v664_v9 = vadd.f32 %v663_v62, %v293_v7  ;;  %v689_v10 = vmul.f32 %v293_v7, %v293_v7  ;;  %v518_v11 = vpop.f32.mrb[15].mxu1 }
 0x15c   :  { %v767_v12 = vadd.f32 %v766_v5, %v752_v4  ;;  %559 = vst [vmem:[#allocation11 + $0x68] sm:$0xff] %v518_v11  ;;  %v728_v13 = vadd.f32 %v727_v3, %v518_v11  ;;  %v753_v14 = vmul.f32 %v518_v11, %v518_v11 }
 0x15d   :  { %1113 = shalt.err (!%p1110_p8)
}
 0x15e   :  { %s1114_s8 = scalar_lea.hbm %s1395_s4, 2048 }
 0x15f   :  { %p1115_p9 = scmp.ne.s32.totalorder %s1395_s4, %s1114_s8  ;;  %p1118_p10 = scmp.lt.u32.totalorder %s1114_s8, %s1395_s4 }
 0x161   :  { %p1120_p11 = pnand %p1118_p10, %p1115_p9 }
 0x163   :  { %1123 = shalt.err (!%p1120_p11)
}
 0x164   :  { %s1211_s15 = smov 128   ;;  %s1212_s16 = smov 8   ;;  %v690_v15 = vmul.f32 %v935_v55, %v935_v55  ;;  %v665_v16 = vadd.f32 %v935_v55, %v664_v9  ;;  %v704_v17 = vadd.f32 %v703_v8, %v689_v10 }
 0x165   :  { %790 = dma.vmem_to_hbm [thread:$0]  %s1329_s13, 2048, %s1395_s4, [#allocation4], %s1211_s15, %s1211_s15, %s1212_s16  }
 0x166   :  { %s1124_s17 = scalar_lea.vmem %s1331_s26, 2048  ;;  %p1129_p13 = scmp.lt.s32.totalorder %s1331_s26, %s1331_s26 }
 0x167   :  { %p1125_p12 = scmp.ne.s32.totalorder %s1331_s26, %s1124_s17  ;;  %p1130_p0 = scmp.lt.s32.totalorder %s1124_s17, %s1124_s17 }
 0x169   :  { %p1131_p1 = por %p1130_p0, %p1129_p13 }
 0x16b   :  { %p1132_p2 = pnand %p1131_p1, %p1125_p12 }
 0x16d   :  { %1135 = shalt.err (!%p1132_p2)
}
 0x16e   :  { %s1136_s20 = scalar_lea.hbm %s1396_s5, 2048 }
 0x16f   :  { %p1137_p3 = scmp.ne.s32.totalorder %s1396_s5, %s1136_s20  ;;  %p1140_p4 = scmp.lt.u32.totalorder %s1136_s20, %s1396_s5 }
 0x171   :  { %p1142_p5 = pnand %p1140_p4, %p1137_p3 }
 0x173   :  { %1145 = shalt.err (!%p1142_p5)
}
 0x174   :  { %802 = dma.vmem_to_hbm [thread:$0]  %s1331_s26, 2048, %s1396_s5, [#allocation12], %s1211_s15, %s1211_s15, %s1212_s16   ;;  %v754_v18 = vmul.f32 %v967_v59, %v967_v59  ;;  %v729_v19 = vadd.f32 %v967_v59, %v728_v13  ;;  %v768_v20 = vadd.f32 %v767_v12, %v753_v14  ;;  %v691_v21 = vmul.f32 %v936_v2, %v936_v2  ;;  %v651_v47 = vld [vmem:[#allocation13] sm:$0x1]  ;;  %v715_v50 = vld [vmem:[#allocation14] sm:$0x1] }
 0x175   :  { %v666_v22 = vadd.f32 %v936_v2, %v665_v16  ;;  %v705_v23 = vadd.f32 %v704_v17, %v690_v15  ;;  %v755_v24 = vmul.f32 %v968_v6, %v968_v6  ;;  %v675_v53 = vld [vmem:[#allocation13 + $0x1] sm:$0x1]  ;;  %s1213_s5 = smov [#allocation13]   ;;  %v739_v56 = vld [vmem:[#allocation14 + $0x1] sm:$0x1]  ;;  %s1214_s25 = smov [#allocation14]  }
 0x176   :  { %v730_v25 = vadd.f32 %v968_v6, %v729_v19  ;;  %v769_v26 = vadd.f32 %v768_v20, %v754_v18  ;;  %s809_s2 = sshll.u32 %s1213_s5, 4  ;;  %s819_s3 = sshll.u32 %s1214_s25, 4  ;;  %s810_s2 = int_to_ptr.vmem [resolvable:$true] %s809_s2  ;;  %s820_s3 = int_to_ptr.vmem [resolvable:$true] %s819_s3 }
 0x177   :  { %v667_v27 = vrot.slane %v666_v22, 4  ;;  %v706_v28 = vadd.f32 %v705_v23, %v691_v21  ;;  %s1146_s13 = scalar_lea.vmem %s810_s2, 128  ;;  %p1151_p7 = scmp.lt.s32.totalorder %s810_s2, %s810_s2 }
 0x178   :  { %v731_v29 = vrot.slane %v730_v25, 4  ;;  %v770_v30 = vadd.f32 %v769_v26, %v755_v24  ;;  %p1147_p6 = scmp.ne.s32.totalorder %s810_s2, %s1146_s13  ;;  %p1152_p8 = scmp.lt.s32.totalorder %s1146_s13, %s1146_s13 }
 0x179   :  { %v668_v31 = vadd.f32 %v667_v27, %v666_v22  ;;  %v707_v32 = vrot.slane %v706_v28, 4 }
 0x17a   :  { %v732_v33 = vadd.f32 %v731_v29, %v730_v25  ;;  %v771_v34 = vrot.slane %v770_v30, 4  ;;  %p1153_p9 = por %p1152_p8, %p1151_p7 }
 0x17b   :  { %v669_v35 = vrot.slane %v668_v31, 2  ;;  %v708_v36 = vadd.f32 %v707_v32, %v706_v28 }
 0x17c   :  { %v733_v37 = vrot.slane %v732_v33, 2  ;;  %v772_v38 = vadd.f32 %v771_v34, %v770_v30  ;;  %p1154_p10 = pnand %p1153_p9, %p1147_p6 }
 0x17d   :  { %v670_v39 = vadd.f32 %v669_v35, %v668_v31  ;;  %v709_v40 = vrot.slane %v708_v36, 2 }
 0x17e   :  { %v734_v41 = vadd.f32 %v733_v37, %v732_v33  ;;  %v773_v42 = vrot.slane %v772_v38, 2 }
 0x17f   :  { %v671_v43 = vrot.slane %v670_v39, 1  ;;  %v710_v44 = vadd.f32 %v709_v40, %v708_v36 }
 0x180   :  { %v735_v45 = vrot.slane %v734_v41, 1  ;;  %v774_v46 = vadd.f32 %v773_v42, %v772_v38 }
 0x181   :  { %v672_v48 = vadd.f32 %v671_v43, %v670_v39  ;;  %v711_v49 = vrot.slane %v710_v44, 1 }
 0x182   :  { %v736_v51 = vadd.f32 %v735_v45, %v734_v41  ;;  %v775_v52 = vrot.slane %v774_v46, 1 }
 0x183   :  { %v712_v54 = vadd.f32 %v711_v49, %v710_v44  ;;  %v673_v55 = vadd.f32 %v672_v48, %v651_v47 }
 0x184   :  { %v737_v57 = vadd.f32 %v736_v51, %v715_v50  ;;  %v776_v58 = vadd.f32 %v775_v52, %v774_v46 }
 0x185   :  { %674 = vst [vmem:[#allocation13] sm:$0x1] %v673_v55  ;;  %v713_v59 = vadd.f32 %v712_v54, %v675_v53 }
 0x186   :  { %738 = vst [vmem:[#allocation14] sm:$0x1] %v737_v57  ;;  %v777_v60 = vadd.f32 %v776_v58, %v739_v56 }
 0x187   :  { %714 = vst [vmem:[#allocation13 + $0x1] sm:$0x1] %v713_v59 }
 0x188   :  { %1157 = shalt.err (!%p1154_p10)
}
 0x189   :  { %s1158_s28 = scalar_lea.hbm %s1397_s6, 128 }
 0x18a   :  { %p1159_p11 = scmp.ne.s32.totalorder %s1397_s6, %s1158_s28  ;;  %p1162_p12 = scmp.lt.u32.totalorder %s1158_s28, %s1397_s6 }
 0x18c   :  { %p1164_p13 = pnand %p1162_p12, %p1159_p11 }
 0x18e   :  { %1167 = shalt.err (!%p1164_p13)
}
 0x18f   :  { %812 = dma.vmem_to_hbm [thread:$0]  %s810_s2, 128, %s1397_s6, [#allocation12]   ;;  %778 = vst [vmem:[#allocation14 + $0x1] sm:$0x1] %v777_v60 }
 0x190   :  { %s1168_s12 = scalar_lea.vmem %s820_s3, 128  ;;  %p1173_p1 = scmp.lt.s32.totalorder %s820_s3, %s820_s3 }
 0x191   :  { %p1169_p0 = scmp.ne.s32.totalorder %s820_s3, %s1168_s12  ;;  %p1174_p2 = scmp.lt.s32.totalorder %s1168_s12, %s1168_s12 }
 0x193   :  { %p1175_p3 = por %p1174_p2, %p1173_p1 }
 0x195   :  { %p1176_p4 = pnand %p1175_p3, %p1169_p0 }
 0x197   :  { %1179 = shalt.err (!%p1176_p4)
}
 0x198   :  { %s1180_s0 = scalar_lea.hbm %s1398_s7, 128 }
 0x199   :  { %p1181_p5 = scmp.ne.s32.totalorder %s1398_s7, %s1180_s0  ;;  %p1184_p6 = scmp.lt.u32.totalorder %s1180_s0, %s1398_s7 }
 0x19b   :  { %p1186_p7 = pnand %p1184_p6, %p1181_p5 }
 0x19d   :  { %1189 = shalt.err (!%p1186_p7)
}
 0x19e   :  { %822 = dma.vmem_to_hbm [thread:$0]  %s820_s3, 128, %s1398_s7, [#allocation15]  }
 0x19f   :  { %1196 = dma.done.wait [#allocation4], 2048  }
 0x1a0   :  { %1197 = vsyncadd [#allocation4], 4294965248 }
 0x1a1   :  { %1198 = dma.done.wait [#allocation12], 2176  }
 0x1a2   :  { %1199 = vsyncadd [#allocation12], 4294965120 }
 0x1a3   :  { %1200 = dma.done.wait [#allocation15], 128  }
 0x1a4   :  { %1201 = vsyncadd [#allocation15], 4294967168 }
 0x1a5   :  { %835 = vsyncpa [#allocation3], 1 }
 0x1a6   :  { %836 = vsyncpa [#allocation6], 1 }
 0x1a7   :  { %837 = vsyncpa [#allocation9], 1 }
 0x1a8   :  { %838 = vsyncpa [#allocation4], 1 }
 0x1a9   :  { %839 = vsyncpa [#allocation12], 1 }
 0x1aa   :  { %840 = vsyncpa [#allocation15], 1 }

</bundles_post_ra>
